<compile_context>
chip_gen: v5e
topology: v5e:2x2
jax: 0.10.0
libtpu: 0.0.40
codegen_flags: <defaults>
</compile_context>

<pallas_src>
import functools

import jax
import jax.numpy as jnp
from jax import lax
from jax.experimental import pallas as pl
from jax.experimental.pallas import tpu as pltpu


# ------------------------------ fused kernel ------------------------------- #

def _emb_sampler_kernel(
    lat_init_ref,   # [TB, L]          f32   (batch-tiled)
    yrow_ref,       # [TB, E]          bf16  (= W1[labels] rows, batch-tiled)
    w2_ref,         # [E, L]           bf16  (resident)
    b2e_ref,        # [1, L]           f32   (b2 + b1 @ W2, resident)
    w0s_ref,        # [n_rep, 2L, 2L]  bf16  (resident stacked block weights)
    b0s_ref,        # [n_rep, 1, 2L]   f32
    w1s_ref,        # [n_rep, 2L, 2L]  bf16
    b1s_ref,        # [n_rep, 1, 2L]   f32
    w0f_ref,        # [2L, 3L]         bf16  (final W0 || learned skip, resident)
    b0f_ref,        # [1, 2L]          f32
    w1f_ref,        # [2L, L]          bf16
    b1f_ref,        # [1, L]           f32
    out_ref,        # [TB, L]          f32   (batch-tiled)
    x_scr,          # [TB, 2L]         f32   VMEM scratch (concat buffer)
):
    L = lat_init_ref.shape[1]
    L2 = 2 * L
    n_rep = w0s_ref.shape[0]

    # LabsEncoder tail (b1 pre-folded into b2e): lat_labs = W1[labels] @ W2 + b2_eff
    lat_labs = jnp.dot(yrow_ref[...], w2_ref[...],
                       preferred_element_type=jnp.float32) + b2e_ref[...]

    # torch.cat([lat_init, lat_labs], 1) -> write both halves of the VMEM scratch.
    x_scr[:, :L] = lat_init_ref[...]
    x_scr[:, L:] = lat_labs
    x0 = x_scr[...]

    # Stacked 2L -> 2L residual blocks; identity skip == plain add (no eye() matmul).
    def block(i, x):
        xb = x.astype(jnp.bfloat16)
        h = jnp.dot(xb, w0s_ref[i], preferred_element_type=jnp.float32) + b0s_ref[i]
        h = jnp.maximum(h, 0.2 * h)                       # LeakyReLU(0.2)
        dx = jnp.dot(h.astype(jnp.bfloat16), w1s_ref[i],
                     preferred_element_type=jnp.float32) + b1s_ref[i]
        return x + dx

    x = lax.fori_loop(0, n_rep, block, x0, unroll=True)

    # Final 2L -> L block: one shared-LHS matmul yields both the pre-activation
    # ([:, :2L]) and the learned bias-free skip ([:, 2L:]).
    xb = x.astype(jnp.bfloat16)
    hs = jnp.dot(xb, w0f_ref[...], preferred_element_type=jnp.float32)   # [TB, 3L]
    pre = hs[:, :L2] + b0f_ref[...]
    h = jnp.maximum(pre, 0.2 * pre)
    skip = hs[:, L2:]
    dx = jnp.dot(h.astype(jnp.bfloat16), w1f_ref[...],
                 preferred_element_type=jnp.float32) + b1f_ref[...]
    out_ref[...] = (dx + skip).astype(out_ref.dtype)


# ------------------------------ call wrapper -------------------------------- #

def _pick_vmem_limit(working_bytes):
    """Generation-aware VMEM limit: <= ~75% of physical (64 MiB v7x, 128 MiB v5e/v6e)."""
    try:
        phys = int(getattr(pltpu.get_tpu_info(), "vmem_capacity_bytes"))
    except Exception:
        phys = 64 * 1024 * 1024          # conservative (v7x) fallback
    cap = int(phys * 3 // 4)
    # TODO(synk): if the resident weight stack ever exceeds `cap`, fall back to
    # streaming w0s/w1s per residual block with a second ("arbitrary") grid axis.
    assert working_bytes < cap, "resident weight stack does not fit VMEM"
    want = max(16 * 1024 * 1024, int(working_bytes * 2))
    return int(min(want, cap))


def emb_sampler_fused_call(lat_init, yrow, w2, b2e,
                           w0s, b0s, w1s, b1s,
                           w0f_cat, b0f, w1f, b1f, *, batch_tile=None):
    B, L = lat_init.shape
    E = yrow.shape[1]
    n_rep, L2, _ = w0s.shape
    L3 = w0f_cat.shape[1]

    tb = batch_tile if batch_tile is not None else min(B, 256)
    assert B % tb == 0, "batch must be a multiple of the batch tile"
    assert tb == B or tb % 8 == 0, "batch tile must be a multiple of 8 (sublanes)"
    n_bt = B // tb

    def resident(shape):
        # Constant index map + single buffering: fetched once, stays VMEM-resident.
        nd = len(shape)
        return pl.BlockSpec(shape, lambda b, _nd=nd: (0,) * _nd,
                            pipeline_mode=pl.Buffered(1))

    def batched(shape):
        nd = len(shape)
        return pl.BlockSpec(shape, lambda b, _nd=nd: (b,) + (0,) * (_nd - 1))

    # VMEM working-set estimate (bf16 weights, f32 biases/activations).
    resident_bytes = (w2.size * 2 + b2e.size * 4 +
                      w0s.size * 2 + b0s.size * 4 + w1s.size * 2 + b1s.size * 4 +
                      w0f_cat.size * 2 + b0f.size * 4 + w1f.size * 2 + b1f.size * 4)
    streamed_bytes = 2 * (tb * L * 4 + tb * E * 2 + tb * L * 4)   # double-buffered I/O
    scratch_bytes = tb * L2 * 4
    vmem_limit = _pick_vmem_limit(resident_bytes + streamed_bytes + scratch_bytes)

    return pl.pallas_call(
        _emb_sampler_kernel,
        out_shape=jax.ShapeDtypeStruct((B, L), jnp.float32),
        grid_spec=pltpu.PrefetchScalarGridSpec(
            num_scalar_prefetch=0,
            grid=(n_bt,),
            in_specs=[
                batched((tb, L)),            # lat_init
                batched((tb, E)),            # yrow = W1[labels]
                resident((E, L)),            # w2
                resident((1, L)),            # b2_eff
                resident((n_rep, L2, L2)),   # stacked w0
                resident((n_rep, 1, L2)),    # stacked b0
                resident((n_rep, L2, L2)),   # stacked w1
                resident((n_rep, 1, L2)),    # stacked b1
                resident((L2, L3)),          # final w0 || skip
                resident((1, L2)),           # final b0
                resident((L2, L)),           # final w1
                resident((1, L)),            # final b1
            ],
            out_specs=pl.BlockSpec((tb, L), lambda b: (b, 0)),
            scratch_shapes=[pltpu.VMEM((tb, L2), jnp.float32)],
        ),
        compiler_params=pltpu.CompilerParams(
            dimension_semantics=("parallel",),   # batch tiles are independent
            vmem_limit_bytes=vmem_limit,
        ),
    )(lat_init, yrow, w2, b2e, w0s, b0s, w1s, b1s, w0f_cat, b0f, w1f, b1f)


# --------------------------- parameter construction ------------------------ #

def _linear_params(key, fin, fout, bias=True, scale=0.02):
    kw, kb = jax.random.split(key)
    w = (scale * jax.random.normal(kw, (fin, fout), jnp.float32)).astype(jnp.bfloat16)
    b = scale * jax.random.normal(kb, (1, fout), jnp.float32) if bias else None
    return w, b


def make_emb_sampler_params(key, lat_size, n_labels, embed_size, n_layers=4):
    assert n_layers >= 2, "EmbSampler needs at least one 2L->2L block and the final block"
    lat_size = lat_size if lat_size > 3 else 512
    L2 = 2 * lat_size
    n_rep = n_layers - 1                      # number of 2L->2L blocks
    keys = jax.random.split(key, 2 + n_layers)

    # LabsEncoder: labs_to_yembed (n_labels -> E), yembed_to_lat (E -> L).
    w1, b1 = _linear_params(keys[0], n_labels, embed_size)
    w2, b2 = _linear_params(keys[1], embed_size, lat_size)
    # Fold b1 through W2 offline: (x + b1) @ W2 + b2 == x @ W2 + (b1 @ W2 + b2).
    b2e = b2 + jnp.dot(b1, w2.astype(jnp.float32))

    # Stacked 2L->2L residual blocks (identity skip -> no skip weight at all).
    w0s, b0s, w1s, b1s = [], [], [], []
    for i in range(n_rep):
        k0, k1 = jax.random.split(keys[2 + i])
        w0, b0 = _linear_params(k0, L2, L2)
        wl1, bl1 = _linear_params(k1, L2, L2)
        w0s.append(w0); b0s.append(b0); w1s.append(wl1); b1s.append(bl1)
    w0s = jnp.stack(w0s); b0s = jnp.stack(b0s)
    w1s = jnp.stack(w1s); b1s = jnp.stack(b1s)

    # Final 2L -> L block (learned bias-free skip since dims differ); fuse the skip
    # weight with the first linear along the output dim -> one [2L, 3L] matmul.
    kf0, kf1, kfs = jax.random.split(keys[2 + n_rep], 3)
    w0f, b0f = _linear_params(kf0, L2, L2)
    w1f, b1f = _linear_params(kf1, L2, lat_size)
    wsf, _ = _linear_params(kfs, L2, lat_size, bias=False)
    w0f_cat = jnp.concatenate([w0f, wsf], axis=1)

    return dict(w1=w1, w2=w2, b2e=b2e,
                w0s=w0s, b0s=b0s, w1s=w1s, b1s=b1s,
                w0f_cat=w0f_cat, b0f=b0f, w1f=w1f, b1f=b1f)


# --------------------------------- forward --------------------------------- #

@functools.partial(jax.jit, static_argnames=("batch_tile",))
def emb_sampler_forward(params, lat_init, labels, batch_tile=None):
    # embedding_mat[y] @ W1 == W1[labels] (one-hot matmul is a row gather).
    yrow = jnp.take(params["w1"], labels, axis=0)          # [B, E] bf16
    return emb_sampler_fused_call(
        lat_init, yrow, params["w2"], params["b2e"],
        params["w0s"], params["b0s"], params["w1s"], params["b1s"],
        params["w0f_cat"], params["b0f"], params["w1f"], params["b1f"],
        batch_tile=batch_tile)


# ----------------------------- pure-JAX reference --------------------------- #

def _emb_sampler_ref(params, lat_init, labels):
    L = lat_init.shape[1]
    yrow = jnp.take(params["w1"], labels, axis=0)
    lat_labs = jnp.dot(yrow, params["w2"],
                       preferred_element_type=jnp.float32) + params["b2e"]
    x = jnp.concatenate([lat_init, lat_labs], axis=1)
    for i in range(params["w0s"].shape[0]):
        xb = x.astype(jnp.bfloat16)
        h = jnp.dot(xb, params["w0s"][i],
                    preferred_element_type=jnp.float32) + params["b0s"][i]
        h = jnp.maximum(h, 0.2 * h)
        x = x + jnp.dot(h.astype(jnp.bfloat16), params["w1s"][i],
                        preferred_element_type=jnp.float32) + params["b1s"][i]
    xb = x.astype(jnp.bfloat16)
    hs = jnp.dot(xb, params["w0f_cat"], preferred_element_type=jnp.float32)
    pre = hs[:, :2 * L] + params["b0f"]
    h = jnp.maximum(pre, 0.2 * pre)
    return (jnp.dot(h.astype(jnp.bfloat16), params["w1f"],
                    preferred_element_type=jnp.float32)
            + params["b1f"] + hs[:, 2 * L:])


# ----------------------------------- main ----------------------------------- #

if __name__ == "__main__":
    B = 16                  # small demo batch; real use: 128-256 rows per call
    batch_tile = 8          # exercises 2 batch tiles with weights resident across them
    lat_size = 128          # 2L = 256, output lanes = 128 -> lane-dense
    n_labels = 16
    embed_size = 128
    n_layers = 4

    key = jax.random.PRNGKey(0)
    kp, kx, ky = jax.random.split(key, 3)

    params = make_emb_sampler_params(kp, lat_size, n_labels, embed_size, n_layers)
    lat_init = jax.random.normal(kx, (B, lat_size), jnp.float32)
    labels = jax.random.randint(ky, (B,), 0, n_labels, jnp.int32)

    out = emb_sampler_forward(params, lat_init, labels, batch_tile=batch_tile)
    out = jax.block_until_ready(out)
    assert out.shape == (B, lat_size) and out.dtype == jnp.float32

    ref = jax.block_until_ready(_emb_sampler_ref(params, lat_init, labels))
    assert jnp.allclose(out, ref, atol=1e-2, rtol=1e-2), "kernel mismatch vs JAX reference"

    print("KERNEL_OK")
</pallas_src>

<mosaic_0001>
module attributes {stable_mosaic.version = 11 : i64} {
  func.func @_emb_sampler_kernel(%arg0: i32, %arg1: memref<8x128xf32, #tpu.memory_space<vmem>>, %arg2: memref<8x128xbf16, #tpu.memory_space<vmem>>, %arg3: memref<128x128xbf16, #tpu.memory_space<vmem>>, %arg4: memref<1x128xf32, #tpu.memory_space<vmem>>, %arg5: memref<3x256x256xbf16, #tpu.memory_space<vmem>>, %arg6: memref<3x1x256xf32, #tpu.memory_space<vmem>>, %arg7: memref<3x256x256xbf16, #tpu.memory_space<vmem>>, %arg8: memref<3x1x256xf32, #tpu.memory_space<vmem>>, %arg9: memref<256x384xbf16, #tpu.memory_space<vmem>>, %arg10: memref<1x256xf32, #tpu.memory_space<vmem>>, %arg11: memref<256x128xbf16, #tpu.memory_space<vmem>>, %arg12: memref<1x128xf32, #tpu.memory_space<vmem>>, %arg13: memref<8x128xf32, #tpu.memory_space<vmem>>, %arg14: memref<8x256xf32, #tpu.memory_space<vmem>>) attributes {dimension_semantics = [#tpu.dimension_semantics<parallel>], iteration_bounds = array<i64: 2>, scalar_prefetch = 0 : i64, scratch_operands = 1 : i64, tpu.core_type = #tpu.core_type<tc>, window_params = [{transform_indices = @transform_0, window_bounds = array<i64: 8, 128>}, {transform_indices = @transform_1, window_bounds = array<i64: 8, 128>}, {pipeline_mode = #tpu.pipeline_mode<synchronous>, transform_indices = @transform_2, window_bounds = array<i64: 128, 128>}, {pipeline_mode = #tpu.pipeline_mode<synchronous>, transform_indices = @transform_3, window_bounds = array<i64: 1, 128>}, {pipeline_mode = #tpu.pipeline_mode<synchronous>, transform_indices = @transform_4, window_bounds = array<i64: 3, 256, 256>}, {pipeline_mode = #tpu.pipeline_mode<synchronous>, transform_indices = @transform_5, window_bounds = array<i64: 3, 1, 256>}, {pipeline_mode = #tpu.pipeline_mode<synchronous>, transform_indices = @transform_6, window_bounds = array<i64: 3, 256, 256>}, {pipeline_mode = #tpu.pipeline_mode<synchronous>, transform_indices = @transform_7, window_bounds = array<i64: 3, 1, 256>}, {pipeline_mode = #tpu.pipeline_mode<synchronous>, transform_indices = @transform_8, window_bounds = array<i64: 256, 384>}, {pipeline_mode = #tpu.pipeline_mode<synchronous>, transform_indices = @transform_9, window_bounds = array<i64: 1, 256>}, {pipeline_mode = #tpu.pipeline_mode<synchronous>, transform_indices = @transform_10, window_bounds = array<i64: 256, 128>}, {pipeline_mode = #tpu.pipeline_mode<synchronous>, transform_indices = @transform_11, window_bounds = array<i64: 1, 128>}, {transform_indices = @transform_12, window_bounds = array<i64: 8, 128>}]} {
    %c0 = arith.constant 0 : index
    %c0_0 = arith.constant 0 : index
    %0 = vector.load %arg2[%c0, %c0_0] : memref<8x128xbf16, #tpu.memory_space<vmem>>, vector<8x128xbf16>
    %c0_1 = arith.constant 0 : index
    %c0_2 = arith.constant 0 : index
    %1 = vector.load %arg3[%c0_1, %c0_2] : memref<128x128xbf16, #tpu.memory_space<vmem>>, vector<128x128xbf16>
    %cst = arith.constant dense<0.000000e+00> : vector<8x128xf32>
    %2 = tpu.matmul %0, %1, %cst {dimension_numbers = #tpu.dot_dimension_numbers<[1], [0], [0], [1], [0, 0, 1, 1], [], []>} : vector<8x128xbf16>, vector<128x128xbf16>, vector<8x128xf32> -> vector<8x128xf32>
    %c0_3 = arith.constant 0 : index
    %c0_4 = arith.constant 0 : index
    %3 = vector.load %arg4[%c0_3, %c0_4] : memref<1x128xf32, #tpu.memory_space<vmem>>, vector<1x128xf32>
    %4 = vector.broadcast %3 : vector<1x128xf32> to vector<8x128xf32>
    %5 = arith.addf %2, %4 : vector<8x128xf32>
    %c0_5 = arith.constant 0 : index
    %c0_6 = arith.constant 0 : index
    %6 = vector.load %arg1[%c0_5, %c0_6] : memref<8x128xf32, #tpu.memory_space<vmem>>, vector<8x128xf32>
    %c0_7 = arith.constant 0 : index
    %c0_8 = arith.constant 0 : index
    %7 = vector.load %arg14[%c0_7, %c0_8] : memref<8x256xf32, #tpu.memory_space<vmem>>, vector<8x128xf32>
    tpu.vector_store %arg14[%c0_7, %c0_8], %6 {strides = array<i32>} : memref<8x256xf32, #tpu.memory_space<vmem>>, vector<8x128xf32>,
    %c0_9 = arith.constant 0 : index
    %c128 = arith.constant 128 : index
    %8 = vector.load %arg14[%c0_9, %c128] : memref<8x256xf32, #tpu.memory_space<vmem>>, vector<8x128xf32>
    tpu.vector_store %arg14[%c0_9, %c128], %5 {strides = array<i32>} : memref<8x256xf32, #tpu.memory_space<vmem>>, vector<8x128xf32>,
    %c0_10 = arith.constant 0 : index
    %c0_11 = arith.constant 0 : index
    %9 = vector.load %arg14[%c0_10, %c0_11] : memref<8x256xf32, #tpu.memory_space<vmem>>, vector<8x256xf32>
    %c0_i32 = arith.constant 0 : i32
    %10 = arith.truncf %9 : vector<8x256xf32> to vector<8x256xbf16>
    %11 = arith.index_cast %c0_i32 : i32 to index
    %c0_12 = arith.constant 0 : index
    %c0_13 = arith.constant 0 : index
    %12 = vector.load %arg5[%11, %c0_12, %c0_13] : memref<3x256x256xbf16, #tpu.memory_space<vmem>>, vector<1x256x256xbf16>
    %13 = vector.shape_cast %12 : vector<1x256x256xbf16> to vector<256x256xbf16>
    %cst_14 = arith.constant dense<0.000000e+00> : vector<8x256xf32>
    %14 = tpu.matmul %10, %13, %cst_14 {dimension_numbers = #tpu.dot_dimension_numbers<[1], [0], [0], [1], [0, 0, 1, 1], [], []>} : vector<8x256xbf16>, vector<256x256xbf16>, vector<8x256xf32> -> vector<8x256xf32>
    %15 = arith.index_cast %c0_i32 : i32 to index
    %c0_15 = arith.constant 0 : index
    %c0_16 = arith.constant 0 : index
    %16 = vector.load %arg6[%15, %c0_15, %c0_16] : memref<3x1x256xf32, #tpu.memory_space<vmem>>, vector<1x1x256xf32>
    %17 = vector.shape_cast %16 : vector<1x1x256xf32> to vector<1x256xf32>
    %18 = vector.broadcast %17 : vector<1x256xf32> to vector<8x256xf32>
    %19 = arith.addf %14, %18 : vector<8x256xf32>
    %cst_17 = arith.constant 2.000000e-01 : f32
    %20 = vector.broadcast %cst_17 : f32 to vector<8x256xf32>
    %21 = arith.mulf %20, %19 : vector<8x256xf32>
    %22 = arith.maximumf %19, %21 : vector<8x256xf32>
    %23 = arith.truncf %22 : vector<8x256xf32> to vector<8x256xbf16>
    %24 = arith.index_cast %c0_i32 : i32 to index
    %c0_18 = arith.constant 0 : index
    %c0_19 = arith.constant 0 : index
    %25 = vector.load %arg7[%24, %c0_18, %c0_19] : memref<3x256x256xbf16, #tpu.memory_space<vmem>>, vector<1x256x256xbf16>
    %26 = vector.shape_cast %25 : vector<1x256x256xbf16> to vector<256x256xbf16>
    %cst_20 = arith.constant dense<0.000000e+00> : vector<8x256xf32>
    %27 = tpu.matmul %23, %26, %cst_20 {dimension_numbers = #tpu.dot_dimension_numbers<[1], [0], [0], [1], [0, 0, 1, 1], [], []>} : vector<8x256xbf16>, vector<256x256xbf16>, vector<8x256xf32> -> vector<8x256xf32>
    %28 = arith.index_cast %c0_i32 : i32 to index
    %c0_21 = arith.constant 0 : index
    %c0_22 = arith.constant 0 : index
    %29 = vector.load %arg8[%28, %c0_21, %c0_22] : memref<3x1x256xf32, #tpu.memory_space<vmem>>, vector<1x1x256xf32>
    %30 = vector.shape_cast %29 : vector<1x1x256xf32> to vector<1x256xf32>
    %31 = vector.broadcast %30 : vector<1x256xf32> to vector<8x256xf32>
    %32 = arith.addf %27, %31 : vector<8x256xf32>
    %33 = arith.addf %9, %32 : vector<8x256xf32>
    %c1_i32 = arith.constant 1 : i32
    %34 = arith.truncf %33 : vector<8x256xf32> to vector<8x256xbf16>
    %35 = arith.index_cast %c1_i32 : i32 to index
    %c0_23 = arith.constant 0 : index
    %c0_24 = arith.constant 0 : index
    %36 = vector.load %arg5[%35, %c0_23, %c0_24] : memref<3x256x256xbf16, #tpu.memory_space<vmem>>, vector<1x256x256xbf16>
    %37 = vector.shape_cast %36 : vector<1x256x256xbf16> to vector<256x256xbf16>
    %cst_25 = arith.constant dense<0.000000e+00> : vector<8x256xf32>
    %38 = tpu.matmul %34, %37, %cst_25 {dimension_numbers = #tpu.dot_dimension_numbers<[1], [0], [0], [1], [0, 0, 1, 1], [], []>} : vector<8x256xbf16>, vector<256x256xbf16>, vector<8x256xf32> -> vector<8x256xf32>
    %39 = arith.index_cast %c1_i32 : i32 to index
    %c0_26 = arith.constant 0 : index
    %c0_27 = arith.constant 0 : index
    %40 = vector.load %arg6[%39, %c0_26, %c0_27] : memref<3x1x256xf32, #tpu.memory_space<vmem>>, vector<1x1x256xf32>
    %41 = vector.shape_cast %40 : vector<1x1x256xf32> to vector<1x256xf32>
    %42 = vector.broadcast %41 : vector<1x256xf32> to vector<8x256xf32>
    %43 = arith.addf %38, %42 : vector<8x256xf32>
    %cst_28 = arith.constant 2.000000e-01 : f32
    %44 = vector.broadcast %cst_28 : f32 to vector<8x256xf32>
    %45 = arith.mulf %44, %43 : vector<8x256xf32>
    %46 = arith.maximumf %43, %45 : vector<8x256xf32>
    %47 = arith.truncf %46 : vector<8x256xf32> to vector<8x256xbf16>
    %48 = arith.index_cast %c1_i32 : i32 to index
    %c0_29 = arith.constant 0 : index
    %c0_30 = arith.constant 0 : index
    %49 = vector.load %arg7[%48, %c0_29, %c0_30] : memref<3x256x256xbf16, #tpu.memory_space<vmem>>, vector<1x256x256xbf16>
    %50 = vector.shape_cast %49 : vector<1x256x256xbf16> to vector<256x256xbf16>
    %cst_31 = arith.constant dense<0.000000e+00> : vector<8x256xf32>
    %51 = tpu.matmul %47, %50, %cst_31 {dimension_numbers = #tpu.dot_dimension_numbers<[1], [0], [0], [1], [0, 0, 1, 1], [], []>} : vector<8x256xbf16>, vector<256x256xbf16>, vector<8x256xf32> -> vector<8x256xf32>
    %52 = arith.index_cast %c1_i32 : i32 to index
    %c0_32 = arith.constant 0 : index
    %c0_33 = arith.constant 0 : index
    %53 = vector.load %arg8[%52, %c0_32, %c0_33] : memref<3x1x256xf32, #tpu.memory_space<vmem>>, vector<1x1x256xf32>
    %54 = vector.shape_cast %53 : vector<1x1x256xf32> to vector<1x256xf32>
    %55 = vector.broadcast %54 : vector<1x256xf32> to vector<8x256xf32>
    %56 = arith.addf %51, %55 : vector<8x256xf32>
    %57 = arith.addf %33, %56 : vector<8x256xf32>
    %c2_i32 = arith.constant 2 : i32
    %58 = arith.truncf %57 : vector<8x256xf32> to vector<8x256xbf16>
    %59 = arith.index_cast %c2_i32 : i32 to index
    %c0_34 = arith.constant 0 : index
    %c0_35 = arith.constant 0 : index
    %60 = vector.load %arg5[%59, %c0_34, %c0_35] : memref<3x256x256xbf16, #tpu.memory_space<vmem>>, vector<1x256x256xbf16>
    %61 = vector.shape_cast %60 : vector<1x256x256xbf16> to vector<256x256xbf16>
    %cst_36 = arith.constant dense<0.000000e+00> : vector<8x256xf32>
    %62 = tpu.matmul %58, %61, %cst_36 {dimension_numbers = #tpu.dot_dimension_numbers<[1], [0], [0], [1], [0, 0, 1, 1], [], []>} : vector<8x256xbf16>, vector<256x256xbf16>, vector<8x256xf32> -> vector<8x256xf32>
    %63 = arith.index_cast %c2_i32 : i32 to index
    %c0_37 = arith.constant 0 : index
    %c0_38 = arith.constant 0 : index
    %64 = vector.load %arg6[%63, %c0_37, %c0_38] : memref<3x1x256xf32, #tpu.memory_space<vmem>>, vector<1x1x256xf32>
    %65 = vector.shape_cast %64 : vector<1x1x256xf32> to vector<1x256xf32>
    %66 = vector.broadcast %65 : vector<1x256xf32> to vector<8x256xf32>
    %67 = arith.addf %62, %66 : vector<8x256xf32>
    %cst_39 = arith.constant 2.000000e-01 : f32
    %68 = vector.broadcast %cst_39 : f32 to vector<8x256xf32>
    %69 = arith.mulf %68, %67 : vector<8x256xf32>
    %70 = arith.maximumf %67, %69 : vector<8x256xf32>
    %71 = arith.truncf %70 : vector<8x256xf32> to vector<8x256xbf16>
    %72 = arith.index_cast %c2_i32 : i32 to index
    %c0_40 = arith.constant 0 : index
    %c0_41 = arith.constant 0 : index
    %73 = vector.load %arg7[%72, %c0_40, %c0_41] : memref<3x256x256xbf16, #tpu.memory_space<vmem>>, vector<1x256x256xbf16>
    %74 = vector.shape_cast %73 : vector<1x256x256xbf16> to vector<256x256xbf16>
    %cst_42 = arith.constant dense<0.000000e+00> : vector<8x256xf32>
    %75 = tpu.matmul %71, %74, %cst_42 {dimension_numbers = #tpu.dot_dimension_numbers<[1], [0], [0], [1], [0, 0, 1, 1], [], []>} : vector<8x256xbf16>, vector<256x256xbf16>, vector<8x256xf32> -> vector<8x256xf32>
    %76 = arith.index_cast %c2_i32 : i32 to index
    %c0_43 = arith.constant 0 : index
    %c0_44 = arith.constant 0 : index
    %77 = vector.load %arg8[%76, %c0_43, %c0_44] : memref<3x1x256xf32, #tpu.memory_space<vmem>>, vector<1x1x256xf32>
    %78 = vector.shape_cast %77 : vector<1x1x256xf32> to vector<1x256xf32>
    %79 = vector.broadcast %78 : vector<1x256xf32> to vector<8x256xf32>
    %80 = arith.addf %75, %79 : vector<8x256xf32>
    %81 = arith.addf %57, %80 : vector<8x256xf32>
    %c3_i32 = arith.constant 3 : i32
    %82 = arith.truncf %81 : vector<8x256xf32> to vector<8x256xbf16>
    %c0_45 = arith.constant 0 : index
    %c0_46 = arith.constant 0 : index
    %83 = vector.load %arg9[%c0_45, %c0_46] : memref<256x384xbf16, #tpu.memory_space<vmem>>, vector<256x384xbf16>
    %cst_47 = arith.constant dense<0.000000e+00> : vector<8x384xf32>
    %84 = tpu.matmul %82, %83, %cst_47 {dimension_numbers = #tpu.dot_dimension_numbers<[1], [0], [0], [1], [0, 0, 1, 1], [], []>} : vector<8x256xbf16>, vector<256x384xbf16>, vector<8x384xf32> -> vector<8x384xf32>
    %85 = vector.extract_strided_slice %84 {offsets = [0, 0], sizes = [8, 256], strides = [1, 1]} : vector<8x384xf32> to vector<8x256xf32>
    %c0_48 = arith.constant 0 : index
    %c0_49 = arith.constant 0 : index
    %86 = vector.load %arg10[%c0_48, %c0_49] : memref<1x256xf32, #tpu.memory_space<vmem>>, vector<1x256xf32>
    %87 = vector.broadcast %86 : vector<1x256xf32> to vector<8x256xf32>
    %88 = arith.addf %85, %87 : vector<8x256xf32>
    %cst_50 = arith.constant 2.000000e-01 : f32
    %89 = vector.broadcast %cst_50 : f32 to vector<8x256xf32>
    %90 = arith.mulf %89, %88 : vector<8x256xf32>
    %91 = arith.maximumf %88, %90 : vector<8x256xf32>
    %92 = vector.extract_strided_slice %84 {offsets = [0, 256], sizes = [8, 128], strides = [1, 1]} : vector<8x384xf32> to vector<8x128xf32>
    %93 = arith.truncf %91 : vector<8x256xf32> to vector<8x256xbf16>
    %c0_51 = arith.constant 0 : index
    %c0_52 = arith.constant 0 : index
    %94 = vector.load %arg11[%c0_51, %c0_52] : memref<256x128xbf16, #tpu.memory_space<vmem>>, vector<256x128xbf16>
    %cst_53 = arith.constant dense<0.000000e+00> : vector<8x128xf32>
    %95 = tpu.matmul %93, %94, %cst_53 {dimension_numbers = #tpu.dot_dimension_numbers<[1], [0], [0], [1], [0, 0, 1, 1], [], []>} : vector<8x256xbf16>, vector<256x128xbf16>, vector<8x128xf32> -> vector<8x128xf32>
    %c0_54 = arith.constant 0 : index
    %c0_55 = arith.constant 0 : index
    %96 = vector.load %arg12[%c0_54, %c0_55] : memref<1x128xf32, #tpu.memory_space<vmem>>, vector<1x128xf32>
    %97 = vector.broadcast %96 : vector<1x128xf32> to vector<8x128xf32>
    %98 = arith.addf %95, %97 : vector<8x128xf32>
    %99 = arith.addf %98, %92 : vector<8x128xf32>
    %c0_56 = arith.constant 0 : index
    %c0_57 = arith.constant 0 : index
    %100 = vector.load %arg13[%c0_56, %c0_57] : memref<8x128xf32, #tpu.memory_space<vmem>>, vector<8x128xf32>
    tpu.vector_store %arg13[%c0_56, %c0_57], %99 {strides = array<i32>} : memref<8x128xf32, #tpu.memory_space<vmem>>, vector<8x128xf32>,
    return
  }
  func.func @transform_0(%arg0: i32) -> (i32, i32) {
    %c0_i32 = arith.constant 0 : i32
    %c0_i32_0 = arith.constant 0 : i32
    return %arg0, %c0_i32 : i32, i32
  }
  func.func @transform_1(%arg0: i32) -> (i32, i32) {
    %c0_i32 = arith.constant 0 : i32
    %c0_i32_0 = arith.constant 0 : i32
    return %arg0, %c0_i32 : i32, i32
  }
  func.func @transform_2(%arg0: i32) -> (i32, i32) {
    %c0_i32 = arith.constant 0 : i32
    %c0_i32_0 = arith.constant 0 : i32
    %c0_i32_1 = arith.constant 0 : i32
    return %c0_i32, %c0_i32_0 : i32, i32
  }
  func.func @transform_3(%arg0: i32) -> (i32, i32) {
    %c0_i32 = arith.constant 0 : i32
    %c0_i32_0 = arith.constant 0 : i32
    %c0_i32_1 = arith.constant 0 : i32
    return %c0_i32, %c0_i32_0 : i32, i32
  }
  func.func @transform_4(%arg0: i32) -> (i32, i32, i32) {
    %c0_i32 = arith.constant 0 : i32
    %c0_i32_0 = arith.constant 0 : i32
    %c0_i32_1 = arith.constant 0 : i32
    %c0_i32_2 = arith.constant 0 : i32
    return %c0_i32, %c0_i32_0, %c0_i32_1 : i32, i32, i32
  }
  func.func @transform_5(%arg0: i32) -> (i32, i32, i32) {
    %c0_i32 = arith.constant 0 : i32
    %c0_i32_0 = arith.constant 0 : i32
    %c0_i32_1 = arith.constant 0 : i32
    %c0_i32_2 = arith.constant 0 : i32
    return %c0_i32, %c0_i32_0, %c0_i32_1 : i32, i32, i32
  }
  func.func @transform_6(%arg0: i32) -> (i32, i32, i32) {
    %c0_i32 = arith.constant 0 : i32
    %c0_i32_0 = arith.constant 0 : i32
    %c0_i32_1 = arith.constant 0 : i32
    %c0_i32_2 = arith.constant 0 : i32
    return %c0_i32, %c0_i32_0, %c0_i32_1 : i32, i32, i32
  }
  func.func @transform_7(%arg0: i32) -> (i32, i32, i32) {
    %c0_i32 = arith.constant 0 : i32
    %c0_i32_0 = arith.constant 0 : i32
    %c0_i32_1 = arith.constant 0 : i32
    %c0_i32_2 = arith.constant 0 : i32
    return %c0_i32, %c0_i32_0, %c0_i32_1 : i32, i32, i32
  }
  func.func @transform_8(%arg0: i32) -> (i32, i32) {
    %c0_i32 = arith.constant 0 : i32
    %c0_i32_0 = arith.constant 0 : i32
    %c0_i32_1 = arith.constant 0 : i32
    return %c0_i32, %c0_i32_0 : i32, i32
  }
  func.func @transform_9(%arg0: i32) -> (i32, i32) {
    %c0_i32 = arith.constant 0 : i32
    %c0_i32_0 = arith.constant 0 : i32
    %c0_i32_1 = arith.constant 0 : i32
    return %c0_i32, %c0_i32_0 : i32, i32
  }
  func.func @transform_10(%arg0: i32) -> (i32, i32) {
    %c0_i32 = arith.constant 0 : i32
    %c0_i32_0 = arith.constant 0 : i32
    %c0_i32_1 = arith.constant 0 : i32
    return %c0_i32, %c0_i32_0 : i32, i32
  }
  func.func @transform_11(%arg0: i32) -> (i32, i32) {
    %c0_i32 = arith.constant 0 : i32
    %c0_i32_0 = arith.constant 0 : i32
    %c0_i32_1 = arith.constant 0 : i32
    return %c0_i32, %c0_i32_0 : i32, i32
  }
  func.func @transform_12(%arg0: i32) -> (i32, i32) {
    %c0_i32 = arith.constant 0 : i32
    %c0_i32_0 = arith.constant 0 : i32
    return %arg0, %c0_i32 : i32, i32
  }
}

</mosaic_0001>

<bundles_post_ra>
// kernel: emb_sampler_forward.1
= control target key start
LH: loop header
LB: loop body
LE: loop exit
PB: predicated region body
PF: predicated region fallthrough
CT: control target
= control target key end

     0   :  { %s4752_s0 = inlined_call_operand.vmem [shape: f32[16,128], index: 0, kind: input, shape index: {}]   ;;  %s4753_s1 = inlined_call_operand.vmem [shape: bf16[16,128], index: 1, kind: input, shape index: {}]   ;;  %s4754_s2 = inlined_call_operand.vmem [shape: bf16[128,128], index: 2, kind: input, shape index: {}]   ;;  %s4755_s3 = inlined_call_operand.vmem [shape: f32[1,128], index: 3, kind: input, shape index: {}]   ;;  %s4756_s4 = inlined_call_operand.hbm [shape: bf16[3,256,256], index: 4, kind: input, shape index: {}]   ;;  %s4757_s5 = inlined_call_operand.vmem [shape: f32[3,1,256], index: 5, kind: input, shape index: {}]   ;;  %s4758_s6 = inlined_call_operand.hbm [shape: bf16[3,256,256], index: 6, kind: input, shape index: {}]   ;;  %s4759_s7 = inlined_call_operand.vmem [shape: f32[3,1,256], index: 7, kind: input, shape index: {}]   ;;  %s4760_s8 = inlined_call_operand.hbm [shape: bf16[256,384], index: 8, kind: input, shape index: {}]   ;;  %s4761_s9 = inlined_call_operand.vmem [shape: f32[1,256], index: 9, kind: input, shape index: {}]   ;;  %s4762_s10 = inlined_call_operand.hbm [shape: bf16[256,128], index: 10, kind: input, shape index: {}]   ;;  %s4763_s11 = inlined_call_operand.vmem [shape: f32[1,128], index: 11, kind: input, shape index: {}]   ;;  %s4764_s12 = inlined_call_operand.hbm [shape: f32[16,128], index: 12, kind: output, shape index: {}]  }
   0x1   :  { %4773 = sst [smem:[#allocation23_spill]] %s4756_s4 }
   0x2   :  { %4774 = sst [smem:[#allocation24_spill]] %s4758_s6 }
   0x3   :  { %17 = vsyncpa [#allocation4], 0 }
   0x4   :  { %18 = vsyncpa [#allocation7], 0 }
   0x5   :  { %19 = vsyncpa [#allocation10], 0 }
   0x6   :  { %20 = vsyncpa [#allocation5], 0 }
   0x7   :  { %22 = vsyncpa [#allocation5 + $0x1], 0  ;;  %s4522_s21 = smov 0   ;;  %s4524_s22 = smov 0  }
   0x8   :  { %s4526_s23 = smov 0   ;;  %s4528_s24 = smov 0  }
   0x9 LB: > { %4775 = sst [smem:[#allocation16_spill]] %s4433_s21  ;;  %s4543_s25 = sadd.s32 4294967295, %s4445_s24   ;;  %s4445_s24 = sphi %s4528_s24, %s4792_s24   ;;  %s4441_s23 = sphi %s4526_s23, %s4794_s23   ;;  %s4437_s22 = sphi %s4524_s22, %s4796_s22   ;;  %s4433_s21 = sphi %s4522_s21, %s4795_s21  }
   0xa   : > { %4776 = sst [smem:[#allocation17_spill]] %s4441_s23  ;;  %s2820_s26 = sadd.s32 4294967294, %s4445_s24  }
   0xb   : > { %4777 = sst [smem:[#allocation18_spill]] %s4445_s24  ;;  %s4547_s27 = sadd.s32 1, %s4445_s24  }
   0xc   : > { %4778 = sst [smem:[#allocation19_spill]] %s4547_s27  ;;  %s297_s28 = sadd.s32 1, %s4441_s23 }
   0xd   : > { %s294_s29 = ssub.s32 %s4445_s24, %s4547_s27  ;;  %p307_p0 = scmp.ne.s32.totalorder %s4441_s23, %s4437_s22 }
   0xe   : > { %p295_p1 = scmp.eq.s32.totalorder %s294_s29, 0  ;;  %p308_p2 = scmp.eq.s32.totalorder %s4543_s25, 1 }
   0xf   : > { %p313_p3 = scmp.ne.s32.totalorder %s4437_s22, %s4433_s21  ;;  %p314_p4 = scmp.eq.s32.totalorder %s2820_s26, 1 }
  0x10   : > { %s4558_s30 = scalar_select %p295_p1, %s4441_s23, %s297_s28  }
  0x11   : > { %p4560_p5 = por %p308_p2, %p307_p0  ;;  %p4564_p6 = por %p314_p4, %p313_p3 }
  0x12   : > { %4779 = sst [smem:[#allocation20_spill]] %s4558_s30  ;;  %p2821_p7 = scmp.ge.s32.totalorder %s4445_s24, 1 }
  0x13   : > { %s4780_s13 = scalar_select %p4560_p5, 1, 0 }
  0x14   : > { %s4782_s14 = scalar_select %p4564_p6, 1, 0 }
  0x15   : > { %4781 = sst [smem:[#allocation21_spill]] %s4780_s13  ;;  %p321_p8 = scmp.lt.s32.totalorder %s4445_s24, 3 }
  0x16   : > { %4783 = sst [smem:[#allocation22_spill]] %s4782_s14  ;;  %p4198_p9 = scmp.eq.s32.totalorder %s4543_s25, 0 }
  0x17   : > { %p4571_p10 = pnand %p2821_p7, %p321_p8  ;;  %s4785_s6 = sld [smem:[#allocation24_spill]] }
  0x18   : > { %s4786_s4 = sld [smem:[#allocation23_spill]]  ;;  %s4447_s29 = smov [#allocation6]  }
  0x19   : > { %p4181_p11 = pneg %p4571_p10  ;;  %s357_s30 = sshll.u32 %s4447_s29, 4  ;;  %s358_s30 = int_to_ptr.vmem [resolvable:$true] %s357_s30 }
  0x1a   : > { %s4448_s16 = smov 128   ;;  %s4449_s17 = smov 8  }
  0x1b   : > { %p4585_p12 = pnand %p4198_p9, %p4181_p11  ;;  %s4451_s27 = smov [#allocation8]  }
  0x1c   : > { %s374_s29 = sshll.u32 %s4451_s27, 4  ;;  %s389_s24 = sshll.u32 %s4762_s10, 4  ;;  %s375_s29 = int_to_ptr.vmem [resolvable:$true] %s374_s29  ;;  %s390_s24 = int_to_ptr.hbm [resolvable:$true] %s389_s24 }
  0x1d   : > { %s355_s18 = sshll.u32 %s4785_s6, 4  ;;  %s4450_s6 = smov [#allocation3]   ;;  %s356_s18 = int_to_ptr.hbm [resolvable:$true] %s355_s18 }
  0x1e   : > { %s338_s26 = sshll.u32 %s4786_s4, 4  ;;  %s340_s23 = sshll.u32 %s4450_s6, 4  ;;  %s339_s26 = int_to_ptr.hbm [resolvable:$true] %s338_s26  ;;  %s341_s23 = int_to_ptr.vmem [resolvable:$true] %s340_s23 }
  0x1f   : > { %4187 = dma.hbm_to_vmem [thread:$0]  (!%p4585_p12), %s356_s18, 12288, %s358_s30, [#allocation7], %s4448_s16, %s4448_s16, %s4449_s17  }
  0x20   : > { %s372_s4 = sshll.u32 %s4760_s8, 4  ;;  %s4452_s13 = smov 192   ;;  %s373_s4 = int_to_ptr.hbm [resolvable:$true] %s372_s4 }
  0x21   : > { %4184 = dma.hbm_to_vmem [thread:$0]  (!%p4585_p12), %s339_s26, 12288, %s341_s23, [#allocation4], %s4448_s16, %s4448_s16, %s4449_s17  }
  0x22   : > { %s4453_s30 = smov 12   ;;  %s4454_s6 = smov [#allocation9]  }
  0x23   : > { %4190 = dma.hbm_to_vmem [thread:$0]  (!%p4585_p12), %s373_s4, 6144, %s375_s29, [#allocation7], %s4452_s13, %s4452_s13, %s4453_s30  }
  0x24   : > { %s391_s18 = sshll.u32 %s4454_s6, 4  ;;  %s4455_s19 = smov 64   ;;  %s392_s18 = int_to_ptr.vmem [resolvable:$true] %s391_s18 }
  0x25   : > { %s4456_s20 = smov 4   ;;  %424 = sbr.rel (%p4571_p10) target bundleno = 1333 (0x535), region = 68 }
  0x26   : > { %4193 = dma.hbm_to_vmem [thread:$0]  (!%p4585_p12), %s390_s24, 2048, %s392_s18, [#allocation10], %s4455_s19, %s4455_s19, %s4456_s20  }
  0x2a   : > { %4416 = dma.done.wait (%p4198_p9), [#allocation4], 12288  }
  0x2b   : > { %4418 = vsyncadd (%p4198_p9), [#allocation4], 4294955008 }
  0x2c   : > { %4420 = dma.done.wait (%p4198_p9), [#allocation7], 18432  }
  0x2d   : > { %4422 = vsyncadd (%p4198_p9), [#allocation7], 4294948864 }
  0x2e   : > { %4424 = dma.done.wait (%p4198_p9), [#allocation10], 2048  }
  0x2f   : > { %4426 = vsyncadd (%p4198_p9), [#allocation10], 4294965248  ;;  %v3906_v0 = vld [vmem:[%s4754_s2 + $0x38] sm:$0xff]  ;;  %v3905_v1 = vld [vmem:[%s4754_s2 + $0x30] sm:$0xff]  ;;  %p485_p13 = scmp.lt.s32.totalorder %s4543_s25, 1  ;;  %s482_s13 = sand.u32 1, %s4437_s22  }
  0x30   : > { %562 = vmatpush.bf16.msra.mxu0 %v3906_v0  ;;  %v3921_v2 = vld [vmem:[#allocation3 + $0x74] sm:$0xf]  ;;  %v2927_v3 = vld [vmem:[#allocation3 + $0x78] sm:$0xf0]  ;;  %v2925_v4 = vld [vmem:[#allocation3 + $0x70] sm:$0xf] }
  0x31   : > { %v2930_v5 = vor.u32 %v3921_v2, %v2927_v3  ;;  %v3922_v6 = vld [vmem:[#allocation3 + $0x74] sm:$0xf0]  ;;  %v3919_v7 = vld [vmem:[#allocation3 + $0x64] sm:$0xf]  ;;  %v2919_v8 = vld [vmem:[#allocation3 + $0x68] sm:$0xf0] }
  0x32   : > { %v2926_v9 = vor.u32 %v3922_v6, %v2925_v4  ;;  %v2917_v10 = vld [vmem:[#allocation3 + $0x60] sm:$0xf]  ;;  %v3920_v11 = vld [vmem:[#allocation3 + $0x64] sm:$0xf0]  ;;  %v2989_v12 = vld [vmem:[#allocation3 + $0xf0] sm:$0xf]  ;;  %v2922_v14 = vor.u32 %v3919_v7, %v2919_v8 }
  0x33   : > { %v3904_v13 = vld [vmem:[%s4754_s2 + $0x28] sm:$0xff]  ;;  %806 = vmatpush.bf16.msra.mxu3 %v2930_v5  ;;  %v3938_v15 = vld [vmem:[#allocation3 + $0xf4] sm:$0xf0]  ;;  %v2918_v16 = vor.u32 %v3920_v11, %v2917_v10  ;;  %v3917_v18 = vld [vmem:[#allocation3 + $0x54] sm:$0xf]  ;;  %s4636_s16 = scalar_select %p485_p13, %s4543_s25, 1 }
  0x34   : > { %563 = vmatpush.bf16.msra.mxu0 %v3905_v1  ;;  %780 = vmatpush.bf16.msra.mxu1 %v2926_v9  ;;  %v2990_v17 = vor.u32 %v3938_v15, %v2989_v12  ;;  %v2911_v19 = vld [vmem:[#allocation3 + $0x58] sm:$0xf0]  ;;  %v2909_v20 = vld [vmem:[#allocation3 + $0x50] sm:$0xf]  ;;  %v3918_v21 = vld [vmem:[#allocation3 + $0x54] sm:$0xf0] }
  0x35   : > { %v2981_v22 = vld [vmem:[#allocation3 + $0xe0] sm:$0xf]  ;;  %v3936_v23 = vld [vmem:[#allocation3 + $0xe4] sm:$0xf0]  ;;  %v2914_v26 = vor.u32 %v3917_v18, %v2911_v19  ;;  %v3915_v27 = vld [vmem:[#allocation3 + $0x44] sm:$0xf]  ;;  %v2910_v28 = vor.u32 %v3918_v21, %v2909_v20 }
  0x36   : > { %793 = vmatpush.bf16.msra.mxu2 %v2990_v17  ;;  %v2982_v24 = vor.u32 %v3936_v23, %v2981_v22  ;;  %v3903_v25 = vld [vmem:[%s4754_s2 + $0x20] sm:$0xff]  ;;  %v2903_v29 = vld [vmem:[#allocation3 + $0x48] sm:$0xf0]  ;;  %v2973_v30 = vld [vmem:[#allocation3 + $0xd0] sm:$0xf]  ;;  %s2834_s18 = sshll.u32 %s4636_s16, 2 }
  0x37   : > { %807 = vmatpush.bf16.msra.mxu3 %v2922_v14  ;;  %v3934_v31 = vld [vmem:[#allocation3 + $0xd4] sm:$0xf0]  ;;  %v2901_v32 = vld [vmem:[#allocation3 + $0x40] sm:$0xf]  ;;  %v3916_v33 = vld [vmem:[#allocation3 + $0x44] sm:$0xf0]  ;;  %v2906_v36 = vor.u32 %v3915_v27, %v2903_v29  ;;  %s492_s24 = scalar_lea.vmem %s4753_s1, %s2834_s18 }
  0x38   : > { %564 = vmatpush.bf16.msra.mxu0 %v3904_v13  ;;  %781 = vmatpush.bf16.msra.mxu1 %v2918_v16  ;;  %v2974_v34 = vor.u32 %v3934_v31, %v2973_v30  ;;  %v3902_v35 = vld [vmem:[%s4754_s2 + $0x18] sm:$0xff]  ;;  %v2965_v37 = vld [vmem:[#allocation3 + $0xc0] sm:$0xf]  ;;  %v3932_v38 = vld [vmem:[#allocation3 + $0xc4] sm:$0xf0]  ;;  %v2902_v39 = vor.u32 %v3916_v33, %v2901_v32  ;;  %s2833_s19 = sshll.u32 %s4636_s16, 3 }
  0x39   : > { %v3913_v40 = vld [vmem:[#allocation3 + $0x34] sm:$0xf]  ;;  %v2895_v41 = vld [vmem:[#allocation3 + $0x38] sm:$0xf0]  ;;  %v2893_v42 = vld [vmem:[#allocation3 + $0x30] sm:$0xf]  ;;  %v2966_v44 = vor.u32 %v3932_v38, %v2965_v37  ;;  %s488_s14 = scalar_lea.vmem %s4752_s0, %s2833_s19 }
  0x3a   : > { %794 = vmatpush.bf16.msra.mxu2 %v2982_v24  ;;  %v3914_v43 = vld [vmem:[#allocation3 + $0x34] sm:$0xf0]  ;;  %v3901_v45 = vld [vmem:[%s4754_s2 + $0x10] sm:$0xff]  ;;  %v2898_v46 = vor.u32 %v3913_v40, %v2895_v41  ;;  %v3911_v50 = vld [vmem:[#allocation3 + $0x24] sm:$0xf]  ;;  %s3896_s15 = sshll.u32 %s4543_s25, 3 }
  0x3b   : > { %808 = vmatpush.bf16.msra.mxu3 %v2914_v26  ;;  %v2957_v47 = vld [vmem:[#allocation3 + $0xb0] sm:$0xf]  ;;  %v3930_v48 = vld [vmem:[#allocation3 + $0xb4] sm:$0xf0]  ;;  %v2894_v49 = vor.u32 %v3914_v43, %v2893_v42  ;;  %v2887_v51 = vld [vmem:[#allocation3 + $0x28] sm:$0xf0]  ;;  %s2703_s29 = scalar_lea.hbm %s4764_s12, %s3896_s15 }
  0x3c   : > { %565 = vmatpush.bf16.msra.mxu0 %v3903_v25  ;;  %782 = vmatpush.bf16.msra.mxu1 %v2910_v28  ;;  %v2885_v52 = vld [vmem:[#allocation3 + $0x20] sm:$0xf]  ;;  %v3912_v53 = vld [vmem:[#allocation3 + $0x24] sm:$0xf0]  ;;  %v2958_v55 = vor.u32 %v3930_v48, %v2957_v47  ;;  %v3937_v56 = vld [vmem:[#allocation3 + $0xf4] sm:$0xf]  ;;  %v2890_v58 = vor.u32 %v3911_v50, %v2887_v51 }
  0x3d   : > { %v3900_v54 = vld [vmem:[%s4754_s2 + $0x8] sm:$0xff]  ;;  %v2991_v57 = vld [vmem:[#allocation3 + $0xf8] sm:$0xf0]  ;;  %v2949_v59 = vld [vmem:[#allocation3 + $0xa0] sm:$0xf]  ;;  %v2886_v61 = vor.u32 %v3912_v53, %v2885_v52  ;;  %s2707_s19 = sshll.u32 %s2703_s29, 4  ;;  %s2708_s19 = int_to_ptr.hbm [resolvable:$true] %s2707_s19 }
  0x3e   : > { %795 = vmatpush.bf16.msra.mxu2 %v2974_v34  ;;  %v3928_v60 = vld [vmem:[#allocation3 + $0xa4] sm:$0xf0]  ;;  %v3909_v62 = vld [vmem:[#allocation3 + $0x14] sm:$0xf]  ;;  %v2879_v63 = vld [vmem:[#allocation3 + $0x18] sm:$0xf0]  ;;  %v2994_v7 = vor.u32 %v3937_v56, %v2991_v57 }
  0x3f   : > { %809 = vmatpush.bf16.msra.mxu3 %v2906_v36  ;;  %v2877_v0 = vld [vmem:[#allocation3 + $0x10] sm:$0xf]  ;;  %v3910_v1 = vld [vmem:[#allocation3 + $0x14] sm:$0xf0]  ;;  %v2950_v2 = vor.u32 %v3928_v60, %v2949_v59  ;;  %v3899_v3 = vld [vmem:[%s4754_s2] sm:$0xff]  ;;  %v2882_v4 = vor.u32 %v3909_v62, %v2879_v63  ;;  %s2693_s25 = scalar_lea.sflag [#allocation5], %s482_s13 }
  0x40   : > { %566 = vmatpush.bf16.msra.mxu0 %v3902_v35  ;;  %783 = vmatpush.bf16.msra.mxu1 %v2902_v39  ;;  %v2941_v5 = vld [vmem:[#allocation3 + $0x90] sm:$0xf]  ;;  %v3926_v6 = vld [vmem:[#allocation3 + $0x94] sm:$0xf0]  ;;  %v3935_v8 = vld [vmem:[#allocation3 + $0xe4] sm:$0xf]  ;;  %v2878_v9 = vor.u32 %v3910_v1, %v2877_v0 }
  0x41   : > { %v3907_v10 = vld [vmem:[#allocation3 + $0x4] sm:$0xf]  ;;  %v2871_v11 = vld [vmem:[#allocation3 + $0x8] sm:$0xf0]  ;;  %v2869_v13 = vld [vmem:[#allocation3] sm:$0xf]  ;;  %v2942_v15 = vor.u32 %v3926_v6, %v2941_v5 }
  0x42   : > { %796 = vmatpush.bf16.msra.mxu2 %v2966_v44  ;;  %v2983_v12 = vld [vmem:[#allocation3 + $0xe8] sm:$0xf0]  ;;  %v3908_v14 = vld [vmem:[#allocation3 + $0x4] sm:$0xf0]  ;;  %v493_v16 = vld [vmem:[%s492_s24] sm:$0xf]  ;;  %v2874_v17 = vor.u32 %v3907_v10, %v2871_v11 }
  0x43   : > { %810 = vmatpush.bf16.msra.mxu3 %v2898_v46  ;;  %v4657_v18 = vld [vmem:[%s488_s14] sm:$0xff]  ;;  %v2986_v19 = vor.u32 %v3935_v8, %v2983_v12  ;;  %v2870_v20 = vor.u32 %v3908_v14, %v2869_v13  ;;  %v3933_v21 = vld [vmem:[#allocation3 + $0xd4] sm:$0xf]  ;;  %v2975_v22 = vld [vmem:[#allocation3 + $0xd8] sm:$0xf0]  ;;  %s2832_s14 = sshll.u32 %s482_s13, 3 }
  0x44   : > { %567 = vmatpush.bf16.msra.mxu0 %v3901_v45  ;;  %784 = vmatpush.bf16.msra.mxu1 %v2894_v49  ;;  %v580_v23 = vpack.c.bf16 %v4657_v18, %v4657_v18  ;;  %v2978_v24 = vor.u32 %v3933_v21, %v2975_v22  ;;  %v3931_v25 = vld [vmem:[#allocation3 + $0xc4] sm:$0xf]  ;;  %v2967_v26 = vld [vmem:[#allocation3 + $0xc8] sm:$0xf0]  ;;  %v3929_v28 = vld [vmem:[#allocation3 + $0xb4] sm:$0xf] }
  0x45   : > { %v2970_v27 = vor.u32 %v3931_v25, %v2967_v26  ;;  %v2959_v29 = vld [vmem:[#allocation3 + $0xb8] sm:$0xf0]  ;;  %v3927_v31 = vld [vmem:[#allocation3 + $0xa4] sm:$0xf]  ;;  %v2951_v32 = vld [vmem:[#allocation3 + $0xa8] sm:$0xf0] }
  0x46   : > { %797 = vmatpush.bf16.msra.mxu2 %v2958_v55  ;;  %v2962_v30 = vor.u32 %v3929_v28, %v2959_v29  ;;  %v2954_v33 = vor.u32 %v3927_v31, %v2951_v32  ;;  %v3925_v34 = vld [vmem:[#allocation3 + $0x94] sm:$0xf]  ;;  %v2943_v35 = vld [vmem:[#allocation3 + $0x98] sm:$0xf0]  ;;  %v2933_v37 = vld [vmem:[#allocation3 + $0x80] sm:$0xf] }
  0x47   : > { %811 = vmatpush.bf16.msra.mxu3 %v2890_v58  ;;  %v2946_v36 = vor.u32 %v3925_v34, %v2943_v35  ;;  %v3924_v38 = vld [vmem:[#allocation3 + $0x84] sm:$0xf0]  ;;  %v3923_v39 = vld [vmem:[#allocation3 + $0x84] sm:$0xf]  ;;  %v2935_v41 = vld [vmem:[#allocation3 + $0x88] sm:$0xf0] }
  0x48   : > { %568 = vmatpush.bf16.msra.mxu0 %v3900_v54  ;;  %785 = vmatpush.bf16.msra.mxu1 %v2886_v61  ;;  %v2934_v40 = vor.u32 %v3924_v38, %v2933_v37  ;;  %v2938_v42 = vor.u32 %v3923_v39, %v2935_v41  ;;  %v3117_v43 = vld [vmem:[#allocation6 + $0xf0] sm:$0xf]  ;;  %v3970_v44 = vld [vmem:[#allocation6 + $0xf4] sm:$0xf0]  ;;  %v3969_v45 = vld [vmem:[#allocation6 + $0xf4] sm:$0xf] }
  0x49   : > { %v3118_v46 = vor.u32 %v3970_v44, %v3117_v43  ;;  %v3119_v47 = vld [vmem:[#allocation6 + $0xf8] sm:$0xf0]  ;;  %v3109_v48 = vld [vmem:[#allocation6 + $0xe0] sm:$0xf]  ;;  %v3968_v49 = vld [vmem:[#allocation6 + $0xe4] sm:$0xf0] }
  0x4a   : > { %798 = vmatpush.bf16.msra.mxu2 %v2950_v2  ;;  %v3122_v50 = vor.u32 %v3969_v45, %v3119_v47  ;;  %v3967_v51 = vld [vmem:[#allocation6 + $0xe4] sm:$0xf]  ;;  %v3111_v52 = vld [vmem:[#allocation6 + $0xe8] sm:$0xf0]  ;;  %v3053_v53 = vld [vmem:[#allocation6 + $0x70] sm:$0xf]  ;;  %v3110_v54 = vor.u32 %v3968_v49, %v3109_v48 }
  0x4b   : > { %812 = vmatpush.bf16.msra.mxu3 %v2882_v4  ;;  %v3954_v55 = vld [vmem:[#allocation6 + $0x74] sm:$0xf0]  ;;  %v3953_v56 = vld [vmem:[#allocation6 + $0x74] sm:$0xf]  ;;  %v3055_v57 = vld [vmem:[#allocation6 + $0x78] sm:$0xf0]  ;;  %v3114_v58 = vor.u32 %v3967_v51, %v3111_v52 }
  0x4c   : > { %569 = vmatpush.bf16.msra.mxu0 %v3899_v3  ;;  %786 = vmatpush.bf16.msra.mxu1 %v2878_v9  ;;  %v3054_v59 = vor.u32 %v3954_v55, %v3053_v53  ;;  %v3058_v60 = vor.u32 %v3953_v56, %v3055_v57  ;;  %v3101_v61 = vld [vmem:[#allocation6 + $0xd0] sm:$0xf]  ;;  %v3966_v62 = vld [vmem:[#allocation6 + $0xd4] sm:$0xf0]  ;;  %v3965_v63 = vld [vmem:[#allocation6 + $0xd4] sm:$0xf] }
  0x4d   : > { %v3103_v0 = vld [vmem:[#allocation6 + $0xd8] sm:$0xf0]  ;;  %v3045_v1 = vld [vmem:[#allocation6 + $0x60] sm:$0xf]  ;;  %v3952_v2 = vld [vmem:[#allocation6 + $0x64] sm:$0xf0]  ;;  %v3102_v6 = vor.u32 %v3966_v62, %v3101_v61 }
  0x4e   : > { %799 = vmatpush.bf16.msra.mxu2 %v2942_v15  ;;  %v3046_v3 = vor.u32 %v3952_v2, %v3045_v1  ;;  %v3951_v4 = vld [vmem:[#allocation6 + $0x64] sm:$0xf]  ;;  %v3047_v5 = vld [vmem:[#allocation6 + $0x68] sm:$0xf0]  ;;  %v3093_v8 = vld [vmem:[#allocation6 + $0xc0] sm:$0xf]  ;;  %v3106_v10 = vor.u32 %v3965_v63, %v3103_v0 }
  0x4f   : > { %570 = vmatmul.bf16.vlgmr.msra.gmra.mxu0 %v493_v16  ;;  %813 = vmatpush.bf16.msra.mxu3 %v2874_v17  ;;  %v3964_v9 = vld [vmem:[#allocation6 + $0xc4] sm:$0xf0]  ;;  %v3037_v11 = vld [vmem:[#allocation6 + $0x50] sm:$0xf]  ;;  %v3950_v12 = vld [vmem:[#allocation6 + $0x54] sm:$0xf0] }
  0x50   : > { %819 = vmatpush.bf16.msrb.mxu0 %v2994_v7  ;;  %787 = vmatpush.bf16.msra.mxu1 %v2870_v20  ;;  %v3050_v7 = vor.u32 %v3951_v4, %v3047_v5  ;;  %v3949_v13 = vld [vmem:[#allocation6 + $0x54] sm:$0xf]  ;;  %v3963_v14 = vld [vmem:[#allocation6 + $0xc4] sm:$0xf]  ;;  %v3095_v15 = vld [vmem:[#allocation6 + $0xc8] sm:$0xf0]  ;;  %v3038_v17 = vor.u32 %v3950_v12, %v3037_v11  ;;  %v3094_v20 = vor.u32 %v3964_v9, %v3093_v8 }
  0x51   : > { %v3039_v16 = vld [vmem:[#allocation6 + $0x58] sm:$0xf0]  ;;  %v3085_v21 = vld [vmem:[#allocation6 + $0xb0] sm:$0xf]  ;;  %v3029_v22 = vld [vmem:[#allocation6 + $0x40] sm:$0xf] }
  0x52   : > { %814 = vmatmul.bf16.vlgmr.msra.gmra.mxu3 %v580_v23  ;;  %800 = vmatpush.bf16.msra.mxu2 %v2934_v40  ;;  %v3962_v25 = vld [vmem:[#allocation6 + $0xb4] sm:$0xf0]  ;;  %v3947_v26 = vld [vmem:[#allocation6 + $0x44] sm:$0xf]  ;;  %v3961_v28 = vld [vmem:[#allocation6 + $0xb4] sm:$0xf] }
  0x53   : > { %788 = vmatmul.bf16.vlgmr.msra.gmra.mxu1 %v580_v23  ;;  %1062 = vmatpush.bf16.msrb.mxu3 %v3058_v60  ;;  %v3948_v23 = vld [vmem:[#allocation6 + $0x44] sm:$0xf0]  ;;  %v3087_v29 = vld [vmem:[#allocation6 + $0xb8] sm:$0xf0]  ;;  %v3086_v32 = vor.u32 %v3962_v25, %v3085_v21  ;;  %v3077_v34 = vld [vmem:[#allocation6 + $0xa0] sm:$0xf] }
  0x54   : > { %820 = vmatpush.bf16.msrb.mxu0 %v2986_v19  ;;  %1036 = vmatpush.bf16.msrb.mxu1 %v3054_v59  ;;  %v3042_v19 = vor.u32 %v3949_v13, %v3039_v16  ;;  %v3960_v35 = vld [vmem:[#allocation6 + $0xa4] sm:$0xf0]  ;;  %v3079_v37 = vld [vmem:[#allocation6 + $0xa8] sm:$0xf0]  ;;  %v4249_v40 = vld [vmem:[%s4755_s3] ss:$0 sm:$0xff] }
  0x55   : > { %v3078_v38 = vor.u32 %v3960_v35, %v3077_v34  ;;  %v3021_v49 = vld [vmem:[#allocation6 + $0x30] sm:$0xf]  ;;  %v3945_v51 = vld [vmem:[#allocation6 + $0x34] sm:$0xf]  ;;  %v3023_v53 = vld [vmem:[#allocation6 + $0x38] sm:$0xf0] }
  0x56   : > { %1049 = vmatpush.bf16.msrb.mxu2 %v3118_v46  ;;  %v3069_v55 = vld [vmem:[#allocation6 + $0x90] sm:$0xf]  ;;  %v3958_v56 = vld [vmem:[#allocation6 + $0x94] sm:$0xf0]  ;;  %v3957_v57 = vld [vmem:[#allocation6 + $0x94] sm:$0xf] }
  0x57   : > { %1063 = vmatpush.bf16.msrb.mxu3 %v3050_v7  ;;  %v3071_v59 = vld [vmem:[#allocation6 + $0x98] sm:$0xf0]  ;;  %v3013_v61 = vld [vmem:[#allocation6 + $0x20] sm:$0xf]  ;;  %v3944_v62 = vld [vmem:[#allocation6 + $0x24] sm:$0xf0] }
  0x58   : > { %821 = vmatpush.bf16.msrb.mxu0 %v2978_v24  ;;  %1037 = vmatpush.bf16.msrb.mxu1 %v3046_v3  ;;  %v3098_v24 = vor.u32 %v3963_v14, %v3095_v15  ;;  %v3074_v60 = vor.u32 %v3957_v57, %v3071_v59  ;;  %v3943_v63 = vld [vmem:[#allocation6 + $0x24] sm:$0xf]  ;;  %v3014_v0 = vor.u32 %v3944_v62, %v3013_v61  ;;  %v3015_v1 = vld [vmem:[#allocation6 + $0x28] sm:$0xf0]  ;;  %v3061_v3 = vld [vmem:[#allocation6 + $0x80] sm:$0xf] }
  0x59   : > { %v3018_v2 = vor.u32 %v3943_v63, %v3015_v1  ;;  %v3956_v4 = vld [vmem:[#allocation6 + $0x84] sm:$0xf0]  ;;  %v3955_v5 = vld [vmem:[#allocation6 + $0x84] sm:$0xf]  ;;  %v3063_v7 = vld [vmem:[#allocation6 + $0x88] sm:$0xf0] }
  0x5a   : > { %1050 = vmatpush.bf16.msrb.mxu2 %v3110_v54  ;;  %v3026_v54 = vor.u32 %v3945_v51, %v3023_v53  ;;  %v3066_v8 = vor.u32 %v3955_v5, %v3063_v7  ;;  %v3005_v9 = vld [vmem:[#allocation6 + $0x10] sm:$0xf]  ;;  %v3941_v11 = vld [vmem:[#allocation6 + $0x14] sm:$0xf]  ;;  %v3007_v13 = vld [vmem:[#allocation6 + $0x18] sm:$0xf0] }
  0x5b   : > { %1064 = vmatpush.bf16.msrb.mxu3 %v3042_v19  ;;  %v3010_v14 = vor.u32 %v3941_v11, %v3007_v13  ;;  %v2997_v15 = vld [vmem:[#allocation6] sm:$0xf]  ;;  %v3940_v16 = vld [vmem:[#allocation6 + $0x4] sm:$0xf0]  ;;  %v4002_v34 = vld [vmem:[#allocation3 + $0x1f4] sm:$0xf0] }
  0x5c   : > { %822 = vmatpush.bf16.msrb.mxu0 %v2970_v27  ;;  %v3031_v27 = vld [vmem:[#allocation6 + $0x48] sm:$0xf0]  ;;  %1038 = vmatpush.bf16.msrb.mxu1 %v3038_v17  ;;  %v3939_v17 = vld [vmem:[#allocation6 + $0x4] sm:$0xf]  ;;  %v2998_v19 = vor.u32 %v3940_v16, %v2997_v15  ;;  %v4001_v35 = vld [vmem:[#allocation3 + $0x1f4] sm:$0xf] }
  0x5d   : > { %v3034_v31 = vor.u32 %v3947_v26, %v3031_v27  ;;  %v3184_v26 = vld [vmem:[#allocation3 + $0x178] sm:$0xf0]  ;;  %v3174_v27 = vld [vmem:[#allocation3 + $0x160] sm:$0xf]  ;;  %v3240_v51 = vld [vmem:[#allocation3 + $0x1e8] sm:$0xf0] }
  0x5e   : > { %1051 = vmatpush.bf16.msrb.mxu2 %v3102_v6  ;;  %v3062_v6 = vor.u32 %v3956_v4, %v3061_v3  ;;  %v3998_v59 = vld [vmem:[#allocation3 + $0x1d4] sm:$0xf0]  ;;  %v3979_v61 = vld [vmem:[#allocation3 + $0x144] sm:$0xf]  ;;  %v3160_v62 = vld [vmem:[#allocation3 + $0x148] sm:$0xf0] }
  0x5f   : > { %1065 = vmatpush.bf16.msrb.mxu3 %v3034_v31  ;;  %v3176_v31 = vld [vmem:[#allocation3 + $0x168] sm:$0xf0]  ;;  %v3232_v63 = vld [vmem:[#allocation3 + $0x1d8] sm:$0xf0]  ;;  %v3163_v4 = vor.u32 %v3979_v61, %v3160_v62  ;;  %s484_s6 = scalar_lea.vmem [#allocation11], %s2832_s14  ;;  %s4385_s20 = sshra.s32 %s2708_s19, 4  ;;  %s4386_s20 = int_to_ptr.hbm [resolvable:$true] %s4385_s20 }
  0x60   : > { %823 = vmatpush.bf16.msrb.mxu0 %v2962_v30  ;;  %v3030_v30 = vor.u32 %v3948_v23, %v3029_v22  ;;  %v3182_v22 = vld [vmem:[#allocation3 + $0x170] sm:$0xf]  ;;  %v3986_v23 = vld [vmem:[#allocation3 + $0x174] sm:$0xf0]  ;;  %v3128_v62 = vld [vmem:[#allocation3 + $0x108] sm:$0xf0]  ;;  %p4392_p3 = scmp.lt.s32.totalorder %s4386_s20, %s4764_s12 }
  0x61   : > { %v3183_v25 = vor.u32 %v3986_v23, %v3182_v22  ;;  %v3977_v22 = vld [vmem:[#allocation3 + $0x134] sm:$0xf]  ;;  %s2705_s18 = sshll.u32 %s484_s6, 4  ;;  %s4387_s4 = scalar_lea.hbm %s4386_s20, 8  ;;  %s2706_s18 = int_to_ptr.vmem [resolvable:$true] %s2705_s18 }
  0x62   : > { %1052 = vmatpush.bf16.msrb.mxu2 %v3094_v20  ;;  %1039 = vmatpush.bf16.msrb.mxu1 %v3030_v30  ;;  %v2999_v20 = vld [vmem:[#allocation6 + $0x8] sm:$0xf0]  ;;  %v3983_v30 = vld [vmem:[#allocation3 + $0x164] sm:$0xf]  ;;  %p4388_p0 = scmp.ne.s32.totalorder %s4386_s20, %s4387_s4  ;;  %s4391_s24 = scalar_lea.hbm %s4764_s12, 16 }
  0x63   : > { %1066 = vmatpush.bf16.msrb.mxu3 %v3026_v54  ;;  %v3002_v21 = vor.u32 %v3939_v17, %v2999_v20  ;;  %v3150_v20 = vld [vmem:[#allocation3 + $0x130] sm:$0xf]  ;;  %p4393_p4 = scmp.lt.s32.totalorder %s4391_s24, %s4387_s4 }
  0x64   : > { %824 = vmatpush.bf16.msrb.mxu0 %v2954_v33  ;;  %v3090_v33 = vor.u32 %v3961_v28, %v3087_v29  ;;  %v3984_v28 = vld [vmem:[#allocation3 + $0x164] sm:$0xf0]  ;;  %p4389_p1 = pnand %p4388_p0, %p4560_p5 }
  0x65   : > { %p4394_p7 = por %p4393_p4, %p4392_p3 }
  0x66   : > { %1053 = vmatpush.bf16.msrb.mxu2 %v3086_v32  ;;  %v3246_v32 = vld [vmem:[#allocation3 + $0x1f0] sm:$0xf]  ;;  %p4390_p2 = pneg %p4389_p1 }
  0x67   : > { %1067 = vmatpush.bf16.msrb.mxu3 %v3018_v2 }
  0x68   : > { %825 = vmatpush.bf16.msrb.mxu0 %v2946_v36  ;;  %v3959_v36 = vld [vmem:[#allocation6 + $0xa4] sm:$0xf]  ;;  %p4395_p8 = pnand %p4394_p7, %p4390_p2 }
  0x69   : > { %v3082_v39 = vor.u32 %v3959_v36, %v3079_v37  ;;  %v3248_v36 = vld [vmem:[#allocation3 + $0x1f8] sm:$0xf0]  ;;  %v3179_v37 = vor.u32 %v3983_v30, %v3176_v31  ;;  %v3142_v30 = vld [vmem:[#allocation3 + $0x120] sm:$0xf]  ;;  %v3976_v31 = vld [vmem:[#allocation3 + $0x124] sm:$0xf0] }
  0x6a   : > { %1054 = vmatpush.bf16.msrb.mxu2 %v3078_v38  ;;  %v3247_v38 = vor.u32 %v4002_v34, %v3246_v32  ;;  %v3975_v34 = vld [vmem:[#allocation3 + $0x124] sm:$0xf] }
  0x6b   : > { %1068 = vmatpush.bf16.msrb.mxu3 %v3010_v14 }
  0x6c   : > { %826 = vmatpush.bf16.msrb.mxu0 %v2938_v42 }
  0x6f   : > { %1069 = vmatpush.bf16.msrb.mxu3 %v3002_v21  ;;  %v3978_v21 = vld [vmem:[#allocation3 + $0x134] sm:$0xf0] }
  0x70   : > { %1075 = vmatpush.bf16.msra.mxu0 %v3122_v50  ;;  %v3946_v50 = vld [vmem:[#allocation6 + $0x34] sm:$0xf0]  ;;  %v3151_v23 = vor.u32 %v3978_v21, %v3150_v20  ;;  %v3367_v21 = vld [vmem:[#allocation6 + $0x1e0] sm:$0xf] }
  0x71   : > { %v3022_v52 = vor.u32 %v3946_v50, %v3021_v49  ;;  %v3999_v50 = vld [vmem:[#allocation3 + $0x1e4] sm:$0xf] }
  0x72   : > { %v3243_v54 = vor.u32 %v3999_v50, %v3240_v51  ;;  %v3136_v50 = vld [vmem:[#allocation3 + $0x118] sm:$0xf0] }
  0x73   : > { %1040 = vmatpush.bf16.msrb.mxu1 %v3022_v52  ;;  %v614_v52 = vld [vmem:[%s4757_s5] sm:$0x3] }
  0x74   : > { %1076 = vmatpush.bf16.msra.mxu0 %v3114_v58  ;;  %v3070_v58 = vor.u32 %v3958_v56, %v3069_v55  ;;  %v3158_v55 = vld [vmem:[#allocation3 + $0x140] sm:$0xf]  ;;  %v3980_v56 = vld [vmem:[#allocation3 + $0x144] sm:$0xf0] }
  0x75   : > { %v3159_v3 = vor.u32 %v3980_v56, %v3158_v55  ;;  %v3208_v56 = vld [vmem:[#allocation3 + $0x1a8] sm:$0xf0] }
  0x76   : > { %1055 = vmatpush.bf16.msrb.mxu2 %v3070_v58  ;;  %v3230_v58 = vld [vmem:[#allocation3 + $0x1d0] sm:$0xf] }
  0x77   : > { %1041 = vmatpush.bf16.msrb.mxu1 %v3014_v0  ;;  %v617_v0 = vperm.slane %v614_v52, 1  ;;  %v3231_v1 = vor.u32 %v3998_v59, %v3230_v58  ;;  %v3126_v58 = vld [vmem:[#allocation3 + $0x100] sm:$0xf]  ;;  %v3972_v59 = vld [vmem:[#allocation3 + $0x104] sm:$0xf0] }
  0x78   : > { %1077 = vmatpush.bf16.msra.mxu0 %v3106_v10  ;;  %v3942_v10 = vld [vmem:[#allocation6 + $0x14] sm:$0xf0]  ;;  %v3127_v61 = vor.u32 %v3972_v59, %v3126_v58 }
  0x79   : > { %v3006_v12 = vor.u32 %v3942_v10, %v3005_v9 }
  0x7a   : > { %1056 = vmatpush.bf16.msrb.mxu2 %v3062_v6  ;;  %v616_v6 = vperm.slane %v614_v52, 0  ;;  %v3206_v52 = vld [vmem:[#allocation3 + $0x1a0] sm:$0xf] }
  0x7b   : > { %1042 = vmatpush.bf16.msrb.mxu1 %v3006_v12 }
  0x7c   : > { %1078 = vmatpush.bf16.msra.mxu0 %v3098_v24  ;;  %v3985_v24 = vld [vmem:[#allocation3 + $0x174] sm:$0xf] }
  0x7d   : > { %v3187_v29 = vor.u32 %v3985_v24, %v3184_v26  ;;  %v3152_v24 = vld [vmem:[#allocation3 + $0x138] sm:$0xf0]  ;;  %v3996_v26 = vld [vmem:[#allocation3 + $0x1c4] sm:$0xf0] }
  0x7f   : > { %1043 = vmatpush.bf16.msrb.mxu1 %v2998_v19  ;;  %1318 = vmatpush.bf16.msra.mxu3 %v3187_v29  ;;  %v3224_v29 = vld [vmem:[#allocation3 + $0x1c8] sm:$0xf0] }
  0x80   : > { %1079 = vmatpush.bf16.msra.mxu0 %v3090_v33  ;;  %v3175_v33 = vor.u32 %v3984_v28, %v3174_v27  ;;  %v3995_v27 = vld [vmem:[#allocation3 + $0x1c4] sm:$0xf] }
  0x81   : > { %v3227_v32 = vor.u32 %v3995_v27, %v3224_v29  ;;  %v3303_v29 = vld [vmem:[#allocation6 + $0x160] sm:$0xf] }
  0x83   : > { %1292 = vmatpush.bf16.msra.mxu1 %v3183_v25  ;;  %1319 = vmatpush.bf16.msra.mxu3 %v3179_v37  ;;  %v3222_v25 = vld [vmem:[#allocation3 + $0x1c0] sm:$0xf]  ;;  %v3214_v37 = vld [vmem:[#allocation3 + $0x1b0] sm:$0xf] }
  0x84   : > { %1080 = vmatpush.bf16.msra.mxu0 %v3082_v39  ;;  %v3251_v39 = vor.u32 %v4001_v35, %v3248_v36  ;;  %v3223_v28 = vor.u32 %v3996_v26, %v3222_v25  ;;  %v3144_v35 = vld [vmem:[#allocation3 + $0x128] sm:$0xf0]  ;;  %v4031_v25 = vld [vmem:[#allocation6 + $0x1e4] sm:$0xf] }
  0x85   : > { %v3147_v36 = vor.u32 %v3975_v34, %v3144_v35  ;;  %v3369_v26 = vld [vmem:[#allocation6 + $0x1e8] sm:$0xf0]  ;;  %v4015_v34 = vld [vmem:[#allocation6 + $0x164] sm:$0xf] }
  0x86   : > { %v3305_v35 = vld [vmem:[#allocation6 + $0x168] sm:$0xf0] }
  0x87   : > { %1293 = vmatpush.bf16.msra.mxu1 %v3175_v33  ;;  %v3143_v33 = vor.u32 %v3976_v31, %v3142_v30  ;;  %v4016_v30 = vld [vmem:[#allocation6 + $0x164] sm:$0xf0]  ;;  %v3359_v31 = vld [vmem:[#allocation6 + $0x1d0] sm:$0xf] }
  0x88   : > { %1081 = vmatpush.bf16.msra.mxu0 %v3074_v60  ;;  %v3997_v60 = vld [vmem:[#allocation3 + $0x1d4] sm:$0xf] }
  0x89   : > { %v3235_v2 = vor.u32 %v3997_v60, %v3232_v63  ;;  %v3971_v60 = vld [vmem:[#allocation3 + $0x104] sm:$0xf] }
  0x8a   : > { %v3131_v63 = vor.u32 %v3971_v60, %v3128_v62 }
  0x8c   : > { %1082 = vmatpush.bf16.msra.mxu0 %v3066_v8 }
  0xcc   : > { %v571_v41 = vpop.f32.mrf.mxu0 }
  0xcd   : > { %v4664_v42 = vadd.f32 %v4249_v40, %v571_v41  ;;  %v3166_v40 = vld [vmem:[#allocation3 + $0x150] sm:$0xf]  ;;  %v3982_v41 = vld [vmem:[#allocation3 + $0x154] sm:$0xf0] }
  0xce   : > { %v3167_v53 = vor.u32 %v3982_v41, %v3166_v40  ;;  %v3216_v41 = vld [vmem:[#allocation3 + $0x1b8] sm:$0xf0] }
  0xcf   : > { %v581_v43 = vpack.c.bf16 %v4664_v42, %v4664_v42 }
  0xd0   : > { %v4668_v44 = vpop.f32.mrf.mxu1  ;;  %1294 = vmatpush.bf16.msra.mxu1 %v3167_v53  ;;  %v3992_v53 = vld [vmem:[#allocation3 + $0x1a4] sm:$0xf0] }
  0xd1   : > { %801 = vmatmul.bf16.vlgmr.msra.gmra.mxu2 %v581_v43  ;;  %827 = vmatmul.bf16.vlgmr.msrb.gmra.mxu0 %v581_v43  ;;  %v3981_v43 = vld [vmem:[#allocation3 + $0x154] sm:$0xf]  ;;  %v790_v9 = vadd.f32 %v4668_v44, %v616_v6  ;;  %v3155_v44 = vor.u32 %v3977_v22, %v3152_v24  ;;  %v3207_v55 = vor.u32 %v3992_v53, %v3206_v52  ;;  %v3190_v6 = vld [vmem:[#allocation3 + $0x180] sm:$0xf]  ;;  %v4032_v22 = vld [vmem:[#allocation6 + $0x1e4] sm:$0xf0] }
  0xd2   : > { %1305 = vmatpush.bf16.msra.mxu2 %v3247_v38  ;;  %1331 = vmatpush.bf16.msrb.mxu0 %v3251_v39  ;;  %v3994_v38 = vld [vmem:[#allocation3 + $0x1b4] sm:$0xf0]  ;;  %v3993_v39 = vld [vmem:[#allocation3 + $0x1b4] sm:$0xf]  ;;  %v3368_v24 = vor.u32 %v4032_v22, %v3367_v21  ;;  %v3353_v52 = vld [vmem:[#allocation6 + $0x1c8] sm:$0xf0] }
  0xd3   : > { %v3215_v40 = vor.u32 %v3994_v38, %v3214_v37  ;;  %v4029_v37 = vld [vmem:[#allocation6 + $0x1d4] sm:$0xf]  ;;  %v3361_v38 = vld [vmem:[#allocation6 + $0x1d8] sm:$0xf0]  ;;  %v3279_v21 = vld [vmem:[#allocation6 + $0x130] sm:$0xf] }
  0xd4   : > { %v573_v45 = vpop.f32.mrf.mxu0  ;;  %1295 = vmatpush.bf16.msra.mxu1 %v3159_v3  ;;  %v3989_v3 = vld [vmem:[#allocation3 + $0x194] sm:$0xf]  ;;  %v4010_v22 = vld [vmem:[#allocation6 + $0x134] sm:$0xf0] }
  0xd5   : > { %v4670_v46 = vpop.f32.mrf.mxu3  ;;  %v3168_v45 = vld [vmem:[#allocation3 + $0x158] sm:$0xf0] }
  0xd6   : > { %v3171_v57 = vor.u32 %v3981_v43, %v3168_v45  ;;  %1332 = vmatpush.bf16.msrb.mxu0 %v3243_v54  ;;  %v816_v5 = vadd.f32 %v4670_v46, %v617_v0  ;;  %v3219_v43 = vor.u32 %v3993_v39, %v3216_v41  ;;  %v3134_v45 = vld [vmem:[#allocation3 + $0x110] sm:$0xf]  ;;  %v3991_v54 = vld [vmem:[#allocation3 + $0x1a4] sm:$0xf]  ;;  %v4014_v41 = vld [vmem:[#allocation6 + $0x154] sm:$0xf0] }
  0xd7   : > { %v3198_v0 = vld [vmem:[#allocation3 + $0x190] sm:$0xf] }
  0xd8   : > { %v791_v47 = vpop.f32.mrf.mxu1  ;;  %1320 = vmatpush.bf16.msra.mxu3 %v3171_v57  ;;  %1296 = vmatpush.bf16.msra.mxu1 %v3151_v23  ;;  %v3211_v57 = vor.u32 %v3991_v54, %v3208_v56  ;;  %v4017_v23 = vld [vmem:[#allocation6 + $0x174] sm:$0xf]  ;;  %v3295_v39 = vld [vmem:[#allocation6 + $0x150] sm:$0xf] }
  0xd9   : > { %v3238_v47 = vld [vmem:[#allocation3 + $0x1e0] sm:$0xf] }
  0xda   : > { %1333 = vmatpush.bf16.msrb.mxu0 %v3235_v2 }
  0xdc   : > { %1321 = vmatpush.bf16.msra.mxu3 %v3163_v4  ;;  %1297 = vmatpush.bf16.msra.mxu1 %v3143_v33  ;;  %v3200_v4 = vld [vmem:[#allocation3 + $0x198] sm:$0xf0]  ;;  %v4030_v33 = vld [vmem:[#allocation6 + $0x1d4] sm:$0xf0] }
  0xdd   : > { %v817_v48 = vpop.f32.mrf.mxu3 }
  0xde   : > { %v4000_v48 = vld [vmem:[#allocation3 + $0x1e4] sm:$0xf0]  ;;  %1334 = vmatpush.bf16.msrb.mxu0 %v3227_v32  ;;  %v3304_v32 = vor.u32 %v4016_v30, %v3303_v29  ;;  %v4023_v29 = vld [vmem:[#allocation6 + $0x1a4] sm:$0xf]  ;;  %v3337_v30 = vld [vmem:[#allocation6 + $0x1a8] sm:$0xf0] }
  0xdf   : > { %v3239_v49 = vor.u32 %v4000_v48, %v3238_v47  ;;  %v3974_v47 = vld [vmem:[#allocation3 + $0x114] sm:$0xf0]  ;;  %v3973_v48 = vld [vmem:[#allocation3 + $0x114] sm:$0xf] }
  0xe0   : > { %1322 = vmatpush.bf16.msra.mxu3 %v3155_v44  ;;  %v3139_v51 = vor.u32 %v3973_v48, %v3136_v50  ;;  %v3313_v44 = vld [vmem:[#allocation6 + $0x178] sm:$0xf0]  ;;  %v4028_v48 = vld [vmem:[#allocation6 + $0x1c4] sm:$0xf0] }
  0xe1   : > { %1306 = vmatpush.bf16.msra.mxu2 %v3239_v49  ;;  %v3135_v49 = vor.u32 %v3974_v47, %v3134_v45  ;;  %v3316_v27 = vor.u32 %v4017_v23, %v3313_v44  ;;  %v3364_v45 = vor.u32 %v4029_v37, %v3361_v38  ;;  %v3296_v47 = vor.u32 %v4014_v41, %v3295_v39  ;;  %v3297_v50 = vld [vmem:[#allocation6 + $0x158] sm:$0xf0]  ;;  %v3335_v23 = vld [vmem:[#allocation6 + $0x1a0] sm:$0xf]  ;;  %v4024_v44 = vld [vmem:[#allocation6 + $0x1a4] sm:$0xf0] }
  0xe2   : > { %1335 = vmatpush.bf16.msrb.mxu0 %v3219_v43  ;;  %v3351_v43 = vld [vmem:[#allocation6 + $0x1c0] sm:$0xf]  ;;  %v4007_v37 = vld [vmem:[#allocation6 + $0x124] sm:$0xf]  ;;  %v3273_v38 = vld [vmem:[#allocation6 + $0x128] sm:$0xf0] }
  0xe3   : > { %1298 = vmatpush.bf16.msra.mxu1 %v3135_v49  ;;  %v4013_v49 = vld [vmem:[#allocation6 + $0x154] sm:$0xf]  ;;  %v3352_v56 = vor.u32 %v4028_v48, %v3351_v43  ;;  %v3329_v43 = vld [vmem:[#allocation6 + $0x198] sm:$0xf0]  ;;  %v4006_v48 = vld [vmem:[#allocation6 + $0x114] sm:$0xf0] }
  0xe4   : > { %1323 = vmatpush.bf16.msra.mxu3 %v3147_v36  ;;  %v3308_v36 = vor.u32 %v4015_v34, %v3305_v35  ;;  %v3300_v53 = vor.u32 %v4013_v49, %v3297_v50  ;;  %v3327_v34 = vld [vmem:[#allocation6 + $0x190] sm:$0xf]  ;;  %v4021_v41 = vld [vmem:[#allocation6 + $0x194] sm:$0xf]  ;;  %v3319_v49 = vld [vmem:[#allocation6 + $0x180] sm:$0xf] }
  0xe5   : > { %1307 = vmatpush.bf16.msra.mxu2 %v3231_v1  ;;  %v3990_v1 = vld [vmem:[#allocation3 + $0x194] sm:$0xf0] }
  0xe6   : > { %1336 = vmatpush.bf16.msrb.mxu0 %v3211_v57  ;;  %v3199_v2 = vor.u32 %v3990_v1, %v3198_v0 }
  0xe7   : > { %1299 = vmatpush.bf16.msra.mxu1 %v3127_v61 }
  0xe8   : > { %1324 = vmatpush.bf16.msra.mxu3 %v3139_v51  ;;  %v4027_v51 = vld [vmem:[#allocation6 + $0x1c4] sm:$0xf] }
  0xe9   : > { %1308 = vmatpush.bf16.msra.mxu2 %v3223_v28  ;;  %v3372_v28 = vor.u32 %v4031_v25, %v3369_v26  ;;  %v3356_v57 = vor.u32 %v4027_v51, %v3353_v52  ;;  %v4009_v25 = vld [vmem:[#allocation6 + $0x134] sm:$0xf]  ;;  %v3281_v26 = vld [vmem:[#allocation6 + $0x138] sm:$0xf0]  ;;  %v4020_v51 = vld [vmem:[#allocation6 + $0x184] sm:$0xf0] }
  0xea   : > { %v4005_v52 = vld [vmem:[#allocation6 + $0x114] sm:$0xf] }
  0xec   : > { %1325 = vmatpush.bf16.msra.mxu3 %v3131_v63 }
  0xed   : > { %1309 = vmatpush.bf16.msra.mxu2 %v3215_v40  ;;  %v3360_v40 = vor.u32 %v4030_v33, %v3359_v31  ;;  %v3340_v31 = vor.u32 %v4023_v29, %v3337_v30  ;;  %v4008_v33 = vld [vmem:[#allocation6 + $0x124] sm:$0xf0]  ;;  %v3416_v29 = vld [vmem:[#allocation3 + $0x240] sm:$0xf] }
  0xee   : > { %v4044_v30 = vld [vmem:[#allocation3 + $0x244] sm:$0xf0] }
  0xf1   : > { %1310 = vmatpush.bf16.msra.mxu2 %v3207_v55  ;;  %v870_v55 = vld [vmem:[%s4759_s7] sm:$0x3] }
  0xf2   : > { %v872_v58 = vperm.slane %v870_v55, 0  ;;  %v873_v0 = vperm.slane %v870_v55, 1 }
  0xf5   : > { %1311 = vmatpush.bf16.msra.mxu2 %v3199_v2 }
 0x14e   : > { %v828_v7 = vpop.f32.mrf.mxu0 }
 0x14f   : > { %v829_v8 = vadd.f32 %v828_v7, %v816_v5  ;;  %v3203_v5 = vor.u32 %v3989_v3, %v3200_v4  ;;  %v3988_v7 = vld [vmem:[#allocation3 + $0x184] sm:$0xf0] }
 0x151   : > { %v833_v10 = vmul.f32 0.2, %v829_v8  ;;  %1337 = vmatpush.bf16.msrb.mxu0 %v3203_v5 }
 0x153   : > { %v835_v11 = vmax.f32 %v829_v8, %v833_v10  ;;  %v3987_v8 = vld [vmem:[#allocation3 + $0x184] sm:$0xf]  ;;  %v3192_v10 = vld [vmem:[#allocation3 + $0x188] sm:$0xf0] }
 0x154   : > { %v802_v12 = vpop.f32.mrf.mxu2 }
 0x155   : > { %v837_v13 = vpack.c.bf16 %v835_v11, %v835_v11  ;;  %v803_v14 = vadd.f32 %v802_v12, %v790_v9  ;;  %v3191_v9 = vor.u32 %v3988_v7, %v3190_v6  ;;  %v3195_v11 = vor.u32 %v3987_v8, %v3192_v10  ;;  %v3375_v12 = vld [vmem:[#allocation6 + $0x1f0] sm:$0xf] }
 0x156   : > { %v830_v15 = vpop.f32.mrf.mxu0 }
 0x157   : > { %v832_v16 = vmul.f32 0.2, %v803_v14  ;;  %1057 = vmatmul.bf16.vlgmr.msrb.gmra.mxu2 %v837_v13  ;;  %1083 = vmatmul.bf16.vlgmr.msra.gmra.mxu0 %v837_v13  ;;  %v4034_v13 = vld [vmem:[#allocation6 + $0x1f4] sm:$0xf0] }
 0x158   : > { %1312 = vmatpush.bf16.msra.mxu2 %v3191_v9  ;;  %1338 = vmatpush.bf16.msrb.mxu0 %v3195_v11  ;;  %v3376_v15 = vor.u32 %v4034_v13, %v3375_v12  ;;  %v4012_v11 = vld [vmem:[#allocation6 + $0x144] sm:$0xf0]  ;;  %v3343_v12 = vld [vmem:[#allocation6 + $0x1b0] sm:$0xf] }
 0x159   : > { %v834_v17 = vmax.f32 %v803_v14, %v832_v16  ;;  %v4033_v14 = vld [vmem:[#allocation6 + $0x1f4] sm:$0xf]  ;;  %v3377_v16 = vld [vmem:[#allocation6 + $0x1f8] sm:$0xf0] }
 0x15b   : > { %v836_v46 = vpack.c.bf16 %v834_v17, %v834_v17  ;;  %v3311_v17 = vld [vmem:[#allocation6 + $0x170] sm:$0xf] }
 0x15c   : > { %v804_v19 = vpop.f32.mrf.mxu2  ;;  %1563 = vmatpush.bf16.msrb.mxu2 %v3376_v15  ;;  %v4011_v15 = vld [vmem:[#allocation6 + $0x144] sm:$0xf] }
 0x15d   : > { %1044 = vmatmul.bf16.vlgmr.msrb.gmra.mxu1 %v836_v46  ;;  %1070 = vmatmul.bf16.vlgmr.msrb.gmra.mxu3 %v836_v46  ;;  %v4018_v46 = vld [vmem:[#allocation6 + $0x174] sm:$0xf0]  ;;  %v3380_v19 = vor.u32 %v4033_v14, %v3377_v16  ;;  %v3289_v16 = vld [vmem:[#allocation6 + $0x148] sm:$0xf0] }
 0x15e   : > { %v3312_v20 = vor.u32 %v4018_v46, %v3311_v17  ;;  %1576 = vmatpush.bf16.msrb.mxu3 %v3316_v27  ;;  %v4026_v14 = vld [vmem:[#allocation6 + $0x1b4] sm:$0xf0]  ;;  %v3292_v46 = vor.u32 %v4011_v15, %v3289_v16  ;;  %v3336_v27 = vor.u32 %v4024_v44, %v3335_v23  ;;  %v4065_v15 = vld [vmem:[#allocation3 + $0x2f4] sm:$0xf]  ;;  %v3506_v16 = vld [vmem:[#allocation3 + $0x2f8] sm:$0xf0] }
 0x15f   : > { %1589 = vmatpush.bf16.msra.mxu0 %v3380_v19  ;;  %v3344_v17 = vor.u32 %v4026_v14, %v3343_v12  ;;  %v4025_v19 = vld [vmem:[#allocation6 + $0x1b4] sm:$0xf]  ;;  %v3504_v12 = vld [vmem:[#allocation3 + $0x2f0] sm:$0xf]  ;;  %v4066_v14 = vld [vmem:[#allocation3 + $0x2f4] sm:$0xf0] }
 0x160   : > { %1550 = vmatpush.bf16.msrb.mxu1 %v3312_v20  ;;  %1564 = vmatpush.bf16.msrb.mxu2 %v3368_v24  ;;  %v3345_v20 = vld [vmem:[#allocation6 + $0x1b8] sm:$0xf0]  ;;  %v3280_v24 = vor.u32 %v4010_v22, %v3279_v21  ;;  %v4045_v21 = vld [vmem:[#allocation3 + $0x254] sm:$0xf]  ;;  %v3496_v23 = vld [vmem:[#allocation3 + $0x2e0] sm:$0xf] }
 0x161   : > { %v3426_v22 = vld [vmem:[#allocation3 + $0x258] sm:$0xf0] }
 0x162   : > { %1577 = vmatpush.bf16.msrb.mxu3 %v3308_v36  ;;  %v4022_v36 = vld [vmem:[#allocation6 + $0x194] sm:$0xf0] }
 0x163   : > { %1590 = vmatpush.bf16.msra.mxu0 %v3372_v28  ;;  %v3284_v28 = vor.u32 %v4009_v25, %v3281_v26  ;;  %v3328_v39 = vor.u32 %v4022_v36, %v3327_v34  ;;  %v4063_v25 = vld [vmem:[#allocation3 + $0x2e4] sm:$0xf]  ;;  %v3498_v26 = vld [vmem:[#allocation3 + $0x2e8] sm:$0xf0]  ;;  %v4061_v34 = vld [vmem:[#allocation3 + $0x2d4] sm:$0xf] }
 0x164   : > { %1551 = vmatpush.bf16.msrb.mxu1 %v3304_v32  ;;  %1565 = vmatpush.bf16.msrb.mxu2 %v3360_v40  ;;  %v3271_v32 = vld [vmem:[#allocation6 + $0x120] sm:$0xf]  ;;  %v3276_v40 = vor.u32 %v4007_v37, %v3273_v38  ;;  %v3418_v36 = vld [vmem:[#allocation3 + $0x248] sm:$0xf0]  ;;  %v3490_v37 = vld [vmem:[#allocation3 + $0x2d8] sm:$0xf0] }
 0x165   : > { %v3272_v35 = vor.u32 %v4008_v33, %v3271_v32  ;;  %v3488_v32 = vld [vmem:[#allocation3 + $0x2d0] sm:$0xf]  ;;  %v4062_v33 = vld [vmem:[#allocation3 + $0x2d4] sm:$0xf0] }
 0x166   : > { %1578 = vmatpush.bf16.msrb.mxu3 %v3300_v53  ;;  %v3265_v53 = vld [vmem:[#allocation6 + $0x118] sm:$0xf0]  ;;  %v3489_v38 = vor.u32 %v4062_v33, %v3488_v32  ;;  %v4056_v32 = vld [vmem:[#allocation3 + $0x2a4] sm:$0xf0]  ;;  %v4055_v33 = vld [vmem:[#allocation3 + $0x2a4] sm:$0xf] }
 0x167   : > { %1591 = vmatpush.bf16.msra.mxu0 %v3364_v45  ;;  %v3332_v45 = vor.u32 %v4021_v41, %v3329_v43  ;;  %v3268_v55 = vor.u32 %v4005_v52, %v3265_v53  ;;  %v3417_v41 = vor.u32 %v4044_v30, %v3416_v29  ;;  %v3394_v29 = vld [vmem:[#allocation3 + $0x218] sm:$0xf0] }
 0x168   : > { %1552 = vmatpush.bf16.msrb.mxu1 %v3296_v47  ;;  %1566 = vmatpush.bf16.msrb.mxu2 %v3352_v56  ;;  %v3263_v47 = vld [vmem:[#allocation6 + $0x110] sm:$0xf]  ;;  %v4019_v56 = vld [vmem:[#allocation6 + $0x184] sm:$0xf] }
 0x169   : > { %v3264_v50 = vor.u32 %v4006_v48, %v3263_v47  ;;  %v4042_v47 = vld [vmem:[#allocation3 + $0x234] sm:$0xf0]  ;;  %v3123_v48 = vld [vmem:[%s4757_s5 + $0x2] sm:$0x3] }
 0x16a   : > { %1579 = vmatpush.bf16.msrb.mxu3 %v3292_v46  ;;  %v3505_v46 = vor.u32 %v4066_v14, %v3504_v12 }
 0x16b   : > { %1592 = vmatpush.bf16.msra.mxu0 %v3356_v57  ;;  %v3321_v57 = vld [vmem:[#allocation6 + $0x188] sm:$0xf0] }
 0x16c   : > { %1567 = vmatpush.bf16.msrb.mxu2 %v3344_v17 }
 0x16e   : > { %1580 = vmatpush.bf16.msrb.mxu3 %v3284_v28  ;;  %v3501_v28 = vor.u32 %v4063_v25, %v3498_v26  ;;  %v3392_v25 = vld [vmem:[#allocation3 + $0x210] sm:$0xf]  ;;  %v4038_v26 = vld [vmem:[#allocation3 + $0x214] sm:$0xf0] }
 0x170   : > { %1568 = vmatpush.bf16.msrb.mxu2 %v3336_v27 }
 0x172   : > { %1581 = vmatpush.bf16.msrb.mxu3 %v3276_v40 }
 0x174   : > { %1569 = vmatpush.bf16.msrb.mxu2 %v3328_v39  ;;  %v3493_v39 = vor.u32 %v4061_v34, %v3490_v37  ;;  %v3384_v37 = vld [vmem:[#allocation3 + $0x200] sm:$0xf] }
 0x176   : > { %1582 = vmatpush.bf16.msrb.mxu3 %v3268_v55 }
 0x1d4   : > { %v1084_v54 = vpop.f32.mrf.mxu0 }
 0x1da   : > { %v1045_v59 = vpop.f32.mrf.mxu1  ;;  %v1058_v60 = vpop.f32.mrf.mxu2 }
 0x1db   : > { %v1046_v61 = vadd.f32 %v1045_v59, %v872_v58  ;;  %v3324_v58 = vor.u32 %v4019_v56, %v3321_v57  ;;  %v3255_v59 = vld [vmem:[#allocation6 + $0x100] sm:$0xf]  ;;  %v1128_v56 = vperm.slane %v3123_v48, 0 }
 0x1dc   : > { %v1086_v62 = vpop.f32.mrf.mxu0 }
 0x1dd   : > { %v1059_v63 = vadd.f32 %v1058_v60, %v1046_v61  ;;  %v4004_v60 = vld [vmem:[#allocation6 + $0x104] sm:$0xf0]  ;;  %v4003_v61 = vld [vmem:[#allocation6 + $0x104] sm:$0xf] }
 0x1de   : > { %v3256_v62 = vor.u32 %v4004_v60, %v3255_v59 }
 0x1df   : > { %v4681_v1 = vadd.f32 %v1059_v63, %v4657_v18  ;;  %v3287_v18 = vld [vmem:[#allocation6 + $0x140] sm:$0xf]  ;;  %v3257_v63 = vld [vmem:[#allocation6 + $0x108] sm:$0xf0] }
 0x1e0   : > { %v1071_v2 = vpop.f32.mrf.mxu3  ;;  %v3288_v13 = vor.u32 %v4012_v11, %v3287_v18  ;;  %v4047_v18 = vld [vmem:[#allocation3 + $0x264] sm:$0xf]  ;;  %v3434_v11 = vld [vmem:[#allocation3 + $0x268] sm:$0xf0] }
 0x1e1   : > { %v1090_v3 = vpack.c.bf16 %v4681_v1, %v4681_v1  ;;  %v1072_v4 = vadd.f32 %v1071_v2, %v873_v0  ;;  %v3260_v0 = vor.u32 %v4003_v61, %v3257_v63  ;;  %v3440_v2 = vld [vmem:[#allocation3 + $0x270] sm:$0xf]  ;;  %v3437_v17 = vor.u32 %v4047_v18, %v3434_v11  ;;  %v4060_v18 = vld [vmem:[#allocation3 + $0x2c4] sm:$0xf0]  ;;  %v4059_v11 = vld [vmem:[#allocation3 + $0x2c4] sm:$0xf] }
 0x1e2   : > { %v1047_v5 = vpop.f32.mrf.mxu1  ;;  %v1060_v6 = vpop.f32.mrf.mxu2  ;;  %1553 = vmatpush.bf16.msrb.mxu1 %v3288_v13 }
 0x1e3   : > { %v1085_v7 = vadd.f32 %v1084_v54, %v1072_v4  ;;  %1300 = vmatmul.bf16.vlgmr.msra.gmra.mxu1 %v1090_v3  ;;  %1326 = vmatmul.bf16.vlgmr.msra.gmra.mxu3 %v1090_v3  ;;  %v3320_v54 = vor.u32 %v4020_v51, %v3319_v49  ;;  %v4050_v3 = vld [vmem:[#allocation3 + $0x274] sm:$0xf0]  ;;  %v4049_v4 = vld [vmem:[#allocation3 + $0x274] sm:$0xf]  ;;  %v3442_v6 = vld [vmem:[#allocation3 + $0x278] sm:$0xf0] }
 0x1e4   : > { %1583 = vmatpush.bf16.msrb.mxu3 %v3260_v0  ;;  %v3441_v5 = vor.u32 %v4050_v3, %v3440_v2  ;;  %v4041_v49 = vld [vmem:[#allocation3 + $0x234] sm:$0xf]  ;;  %v1129_v51 = vperm.slane %v3123_v48, 1 }
 0x1e5   : > { %v4686_v8 = vadd.f32 %v1085_v7, %v4664_v42  ;;  %v3348_v42 = vor.u32 %v4025_v19, %v3345_v20  ;;  %1570 = vmatpush.bf16.msrb.mxu2 %v3320_v54  ;;  %v3432_v7 = vld [vmem:[#allocation3 + $0x260] sm:$0xf]  ;;  %v3509_v19 = vor.u32 %v4065_v15, %v3506_v16  ;;  %v3424_v20 = vld [vmem:[#allocation3 + $0x250] sm:$0xf]  ;;  %v4040_v16 = vld [vmem:[#allocation3 + $0x224] sm:$0xf0] }
 0x1e6   : > { %1554 = vmatpush.bf16.msrb.mxu1 %v3280_v24  ;;  %v4064_v24 = vld [vmem:[#allocation3 + $0x2e4] sm:$0xf0]  ;;  %v3400_v15 = vld [vmem:[#allocation3 + $0x220] sm:$0xf] }
 0x1e7   : > { %v1091_v9 = vpack.c.bf16 %v4686_v8, %v4686_v8  ;;  %1593 = vmatpush.bf16.msra.mxu0 %v3348_v42  ;;  %v4046_v42 = vld [vmem:[#allocation3 + $0x254] sm:$0xf0]  ;;  %v3497_v44 = vor.u32 %v4064_v24, %v3496_v23  ;;  %v4057_v23 = vld [vmem:[#allocation3 + $0x2b4] sm:$0xf]  ;;  %v3474_v24 = vld [vmem:[#allocation3 + $0x2b8] sm:$0xf0] }
 0x1e8   : > { %v1073_v10 = vpop.f32.mrf.mxu3  ;;  %v3425_v27 = vor.u32 %v4046_v42, %v3424_v20  ;;  %v3472_v42 = vld [vmem:[#allocation3 + $0x2b0] sm:$0xf] }
 0x1e9   : > { %1313 = vmatmul.bf16.vlgmr.msra.gmra.mxu2 %v1091_v9  ;;  %1339 = vmatmul.bf16.vlgmr.msrb.gmra.mxu0 %v1091_v9  ;;  %v4048_v9 = vld [vmem:[#allocation3 + $0x264] sm:$0xf0]  ;;  %v3445_v10 = vor.u32 %v4049_v4, %v3442_v6 }
 0x1ea   : > { %1555 = vmatpush.bf16.msrb.mxu1 %v3272_v35  ;;  %v3433_v13 = vor.u32 %v4048_v9, %v3432_v7  ;;  %1819 = vmatpush.bf16.msra.mxu2 %v3505_v46  ;;  %v4043_v35 = vld [vmem:[#allocation3 + $0x244] sm:$0xf]  ;;  %v3401_v46 = vor.u32 %v4040_v16, %v3400_v15  ;;  %v3617_v15 = vld [vmem:[#allocation6 + $0x2d0] sm:$0xf] }
 0x1eb   : > { %1594 = vmatpush.bf16.msra.mxu0 %v3340_v31  ;;  %1832 = vmatpush.bf16.msra.mxu3 %v3445_v10  ;;  %v3429_v31 = vor.u32 %v4045_v21, %v3426_v22  ;;  %v3421_v43 = vor.u32 %v4043_v35, %v3418_v36  ;;  %v3480_v10 = vld [vmem:[#allocation3 + $0x2c0] sm:$0xf]  ;;  %v4058_v21 = vld [vmem:[#allocation3 + $0x2b4] sm:$0xf0]  ;;  %v3466_v35 = vld [vmem:[#allocation3 + $0x2a8] sm:$0xf0] }
 0x1ec   : > { %v3481_v12 = vor.u32 %v4060_v18, %v3480_v10  ;;  %v3473_v22 = vor.u32 %v4058_v21, %v3472_v42  ;;  %v3469_v36 = vor.u32 %v4055_v33, %v3466_v35  ;;  %v4095_v10 = vld [vmem:[#allocation6 + $0x2e4] sm:$0xf]  ;;  %v3627_v18 = vld [vmem:[#allocation6 + $0x2e8] sm:$0xf0]  ;;  %v4093_v42 = vld [vmem:[#allocation6 + $0x2d4] sm:$0xf] }
 0x1ed   : > { %v3619_v21 = vld [vmem:[#allocation6 + $0x2d8] sm:$0xf0]  ;;  %v3252_v33 = vld [vmem:[%s4759_s7 + $0x2] sm:$0x3] }
 0x1ee   : > { %1556 = vmatpush.bf16.msrb.mxu1 %v3264_v50  ;;  %1820 = vmatpush.bf16.msra.mxu2 %v3497_v44  ;;  %v3410_v50 = vld [vmem:[#allocation3 + $0x238] sm:$0xf0]  ;;  %v3477_v44 = vor.u32 %v4057_v23, %v3474_v24  ;;  %v4078_v24 = vld [vmem:[#allocation6 + $0x254] sm:$0xf0] }
 0x1ef   : > { %1595 = vmatpush.bf16.msra.mxu0 %v3332_v45  ;;  %1833 = vmatpush.bf16.msra.mxu3 %v3437_v17  ;;  %v3408_v45 = vld [vmem:[#allocation3 + $0x230] sm:$0xf]  ;;  %v3413_v53 = vor.u32 %v4041_v49, %v3410_v50  ;;  %v4039_v17 = vld [vmem:[#allocation3 + $0x224] sm:$0xf]  ;;  %v4053_v49 = vld [vmem:[#allocation3 + $0x294] sm:$0xf] }
 0x1f0   : > { %v3409_v52 = vor.u32 %v4042_v47, %v3408_v45  ;;  %v3456_v45 = vld [vmem:[#allocation3 + $0x290] sm:$0xf]  ;;  %v4054_v47 = vld [vmem:[#allocation3 + $0x294] sm:$0xf0]  ;;  %v3458_v50 = vld [vmem:[#allocation3 + $0x298] sm:$0xf0] }
 0x1f1   : > { %v3457_v48 = vor.u32 %v4054_v47, %v3456_v45 }
 0x1f2   : > { %1557 = vmatpush.bf16.msrb.mxu1 %v3256_v62  ;;  %1821 = vmatpush.bf16.msra.mxu2 %v3489_v38  ;;  %v4036_v38 = vld [vmem:[#allocation3 + $0x204] sm:$0xf0] }
 0x1f3   : > { %1596 = vmatpush.bf16.msra.mxu0 %v3324_v58  ;;  %1834 = vmatpush.bf16.msra.mxu3 %v3429_v31  ;;  %v3464_v31 = vld [vmem:[#allocation3 + $0x2a0] sm:$0xf] }
 0x1f4   : > { %v3465_v34 = vor.u32 %v4056_v32, %v3464_v31  ;;  %v3611_v31 = vld [vmem:[#allocation6 + $0x2c8] sm:$0xf0] }
 0x1f6   : > { %1806 = vmatpush.bf16.msra.mxu1 %v3441_v5  ;;  %1822 = vmatpush.bf16.msra.mxu2 %v3481_v12  ;;  %v3630_v12 = vor.u32 %v4095_v10, %v3627_v18  ;;  %v4073_v10 = vld [vmem:[#allocation6 + $0x234] sm:$0xf]  ;;  %v3539_v18 = vld [vmem:[#allocation6 + $0x238] sm:$0xf0] }
 0x1f7   : > { %1845 = vmatpush.bf16.msrb.mxu0 %v3509_v19  ;;  %1835 = vmatpush.bf16.msra.mxu3 %v3421_v43  ;;  %v3402_v19 = vld [vmem:[#allocation3 + $0x228] sm:$0xf0] }
 0x1f8   : > { %v3405_v20 = vor.u32 %v4039_v17, %v3402_v19  ;;  %v4094_v17 = vld [vmem:[#allocation6 + $0x2d4] sm:$0xf0]  ;;  %v3563_v19 = vld [vmem:[#allocation6 + $0x268] sm:$0xf0] }
 0x1f9   : > { %v3618_v23 = vor.u32 %v4094_v17, %v3617_v15  ;;  %v4072_v17 = vld [vmem:[#allocation6 + $0x224] sm:$0xf0] }
 0x1fa   : > { %1807 = vmatpush.bf16.msra.mxu1 %v3433_v13  ;;  %v3482_v13 = vld [vmem:[#allocation3 + $0x2c8] sm:$0xf0]  ;;  %1823 = vmatpush.bf16.msra.mxu2 %v3473_v22  ;;  %v3553_v22 = vld [vmem:[#allocation6 + $0x250] sm:$0xf] }
 0x1fb   : > { %1846 = vmatpush.bf16.msrb.mxu0 %v3501_v28  ;;  %1836 = vmatpush.bf16.msra.mxu3 %v3413_v53  ;;  %v3485_v14 = vor.u32 %v4059_v11, %v3482_v13  ;;  %v3393_v28 = vor.u32 %v4038_v26, %v3392_v25  ;;  %v4052_v53 = vld [vmem:[#allocation3 + $0x284] sm:$0xf0]  ;;  %v3561_v13 = vld [vmem:[#allocation6 + $0x260] sm:$0xf]  ;;  %v3622_v25 = vor.u32 %v4093_v42, %v3619_v21  ;;  %v4071_v42 = vld [vmem:[#allocation6 + $0x224] sm:$0xf] }
 0x1fc   : > { %v3554_v26 = vor.u32 %v4078_v24, %v3553_v22  ;;  %v3531_v21 = vld [vmem:[#allocation6 + $0x228] sm:$0xf0]  ;;  %v4085_v24 = vld [vmem:[#allocation6 + $0x294] sm:$0xf] }
 0x1fe   : > { %1808 = vmatpush.bf16.msra.mxu1 %v3425_v27  ;;  %v4037_v27 = vld [vmem:[#allocation3 + $0x214] sm:$0xf]  ;;  %1824 = vmatpush.bf16.msra.mxu2 %v3465_v34 }
 0x1ff   : > { %1847 = vmatpush.bf16.msrb.mxu0 %v3493_v39  ;;  %1837 = vmatpush.bf16.msra.mxu3 %v3405_v20  ;;  %v3397_v30 = vor.u32 %v4037_v27, %v3394_v29  ;;  %v4035_v39 = vld [vmem:[#allocation3 + $0x204] sm:$0xf]  ;;  %v4092_v27 = vld [vmem:[#allocation6 + $0x2c4] sm:$0xf0]  ;;  %v3555_v29 = vld [vmem:[#allocation6 + $0x258] sm:$0xf0] }
 0x202   : > { %1809 = vmatpush.bf16.msra.mxu1 %v3417_v41  ;;  %v3386_v41 = vld [vmem:[#allocation3 + $0x208] sm:$0xf0]  ;;  %1825 = vmatpush.bf16.msra.mxu2 %v3457_v48 }
 0x203   : > { %1848 = vmatpush.bf16.msrb.mxu0 %v3485_v14  ;;  %1838 = vmatpush.bf16.msra.mxu3 %v3397_v30  ;;  %v3389_v43 = vor.u32 %v4035_v39, %v3386_v41  ;;  %v4080_v14 = vld [vmem:[#allocation6 + $0x264] sm:$0xf0]  ;;  %v4091_v30 = vld [vmem:[#allocation6 + $0x2c4] sm:$0xf] }
 0x204   : > { %v3562_v16 = vor.u32 %v4080_v14, %v3561_v13  ;;  %v3614_v35 = vor.u32 %v4091_v30, %v3611_v31  ;;  %v4087_v13 = vld [vmem:[#allocation6 + $0x2a4] sm:$0xf]  ;;  %v3595_v14 = vld [vmem:[#allocation6 + $0x2a8] sm:$0xf0]  ;;  %v4084_v30 = vld [vmem:[#allocation6 + $0x284] sm:$0xf0] }
 0x205   : > { %v3598_v15 = vor.u32 %v4087_v13, %v3595_v14  ;;  %v4069_v31 = vld [vmem:[#allocation6 + $0x214] sm:$0xf]  ;;  %v4114_v13 = vld [vmem:[#allocation8 + $0x7c] sm:$0xf]  ;;  %v3785_v14 = vld [vmem:[#allocation8 + $0x120] sm:$0xf] }
 0x206   : > { %1810 = vmatpush.bf16.msra.mxu1 %v3409_v52  ;;  %v3448_v52 = vld [vmem:[#allocation3 + $0x280] sm:$0xf] }
 0x207   : > { %1849 = vmatpush.bf16.msrb.mxu0 %v3477_v44  ;;  %1839 = vmatpush.bf16.msra.mxu3 %v3389_v43  ;;  %v3609_v44 = vld [vmem:[#allocation6 + $0x2c0] sm:$0xf]  ;;  %v1387_v43 = vperm.slane %v3252_v33, 1 }
 0x208   : > { %v3610_v34 = vor.u32 %v4092_v27, %v3609_v44  ;;  %v3587_v44 = vld [vmem:[#allocation6 + $0x298] sm:$0xf0]  ;;  %v4070_v27 = vld [vmem:[#allocation6 + $0x214] sm:$0xf0] }
 0x20a   : > { %1811 = vmatpush.bf16.msra.mxu1 %v3401_v46  ;;  %v4079_v46 = vld [vmem:[#allocation6 + $0x264] sm:$0xf] }
 0x20b   : > { %1850 = vmatpush.bf16.msrb.mxu0 %v3469_v36  ;;  %v3566_v20 = vor.u32 %v4079_v46, %v3563_v19  ;;  %v3585_v46 = vld [vmem:[#allocation6 + $0x290] sm:$0xf] }
 0x20e   : > { %1812 = vmatpush.bf16.msra.mxu1 %v3393_v28  ;;  %v4077_v28 = vld [vmem:[#allocation6 + $0x254] sm:$0xf] }
 0x20f   : > { %v3558_v32 = vor.u32 %v4077_v28, %v3555_v29  ;;  %v3577_v28 = vld [vmem:[#allocation6 + $0x280] sm:$0xf] }
 0x260   : > { %v1301_v40 = vpop.f32.mrf.mxu1 }
 0x261   : > { %v1302_v60 = vadd.f32 %v1301_v40, %v1128_v56  ;;  %v3385_v40 = vor.u32 %v4036_v38, %v3384_v37  ;;  %v3450_v56 = vld [vmem:[#allocation3 + $0x288] sm:$0xf0]  ;;  %v1386_v37 = vperm.slane %v3252_v33, 0  ;;  %v3578_v33 = vor.u32 %v4084_v30, %v3577_v28  ;;  %v3773_v28 = vld [vmem:[#allocation8 + $0x108] sm:$0xf] }
 0x262   : > { %v3799_v30 = vld [vmem:[#allocation8 + $0x144] sm:$0xf0] }
 0x263   : > { %1813 = vmatpush.bf16.msra.mxu1 %v3385_v40 }
 0x266   : > { %v1327_v54 = vpop.f32.mrf.mxu3  ;;  %v1340_v55 = vpop.f32.mrf.mxu0 }
 0x267   : > { %v1328_v57 = vadd.f32 %v1327_v54, %v1129_v51  ;;  %v3461_v51 = vor.u32 %v4053_v49, %v3458_v50  ;;  %v4051_v54 = vld [vmem:[#allocation3 + $0x284] sm:$0xf] }
 0x268   : > { %v1303_v58 = vpop.f32.mrf.mxu1 }
 0x269   : > { %v1341_v59 = vadd.f32 %v1340_v55, %v1328_v57  ;;  %1851 = vmatpush.bf16.msrb.mxu0 %v3461_v51  ;;  %v3449_v55 = vor.u32 %v4052_v53, %v3448_v52  ;;  %v3453_v57 = vor.u32 %v4051_v54, %v3450_v56  ;;  %v3633_v58 = vld [vmem:[#allocation6 + $0x2f0] sm:$0xf] }
 0x26b   : > { %v1345_v61 = vmul.f32 0.2, %v1341_v59  ;;  %1826 = vmatpush.bf16.msra.mxu2 %v3449_v55 }
 0x26c   : > { %v1314_v62 = vpop.f32.mrf.mxu2 }
 0x26d   : > { %v1347_v63 = vmax.f32 %v1341_v59, %v1345_v61  ;;  %v1315_v0 = vadd.f32 %v1314_v62, %v1302_v60  ;;  %1852 = vmatpush.bf16.msrb.mxu0 %v3453_v57  ;;  %v4098_v59 = vld [vmem:[#allocation6 + $0x2f4] sm:$0xf0]  ;;  %v4097_v60 = vld [vmem:[#allocation6 + $0x2f4] sm:$0xf]  ;;  %v3635_v62 = vld [vmem:[#allocation6 + $0x2f8] sm:$0xf0] }
 0x26e   : > { %v1329_v2 = vpop.f32.mrf.mxu3  ;;  %v1342_v3 = vpop.f32.mrf.mxu0  ;;  %v3634_v61 = vor.u32 %v4098_v59, %v3633_v58  ;;  %v4076_v57 = vld [vmem:[#allocation6 + $0x244] sm:$0xf0]  ;;  %v3601_v58 = vld [vmem:[#allocation6 + $0x2b0] sm:$0xf] }
 0x26f   : > { %v1349_v4 = vpack.c.bf16 %v1347_v63, %v1347_v63  ;;  %v1344_v5 = vmul.f32 0.2, %v1315_v0  ;;  %v3569_v63 = vld [vmem:[#allocation6 + $0x270] sm:$0xf]  ;;  %v3638_v2 = vor.u32 %v4097_v60, %v3635_v62  ;;  %v4090_v60 = vld [vmem:[#allocation6 + $0x2b4] sm:$0xf0] }
 0x270   : > { %v3547_v62 = vld [vmem:[#allocation6 + $0x248] sm:$0xf0] }
 0x271   : > { %v1346_v6 = vmax.f32 %v1315_v0, %v1344_v5  ;;  %1571 = vmatmul.bf16.vlgmr.msrb.gmra.mxu2 %v1349_v4  ;;  %1597 = vmatmul.bf16.vlgmr.msra.gmra.mxu0 %v1349_v4  ;;  %v4082_v0 = vld [vmem:[#allocation6 + $0x274] sm:$0xf0]  ;;  %v3625_v4 = vld [vmem:[#allocation6 + $0x2e0] sm:$0xf]  ;;  %v4096_v5 = vld [vmem:[#allocation6 + $0x2e4] sm:$0xf0] }
 0x272   : > { %v3570_v3 = vor.u32 %v4082_v0, %v3569_v63  ;;  %2077 = vmatpush.bf16.msrb.mxu2 %v3634_v61  ;;  %2103 = vmatpush.bf16.msra.mxu0 %v3638_v2  ;;  %v4075_v61 = vld [vmem:[#allocation6 + $0x244] sm:$0xf]  ;;  %v3602_v63 = vor.u32 %v4090_v60, %v3601_v58  ;;  %v4089_v2 = vld [vmem:[#allocation6 + $0x2b4] sm:$0xf]  ;;  %v3701_v58 = vld [vmem:[#allocation8 + $0x78] sm:$0xf] }
 0x273   : > { %v1348_v7 = vpack.c.bf16 %v1346_v6, %v1346_v6  ;;  %v4081_v6 = vld [vmem:[#allocation6 + $0x274] sm:$0xf]  ;;  %v3550_v0 = vor.u32 %v4075_v61, %v3547_v62  ;;  %v4115_v60 = vld [vmem:[#allocation8 + $0x80] sm:$0xf0]  ;;  %v4120_v62 = vld [vmem:[#allocation8 + $0xac] sm:$0xf] }
 0x274   : > { %v1316_v9 = vpop.f32.mrf.mxu2 }
 0x275   : > { %1558 = vmatmul.bf16.vlgmr.msrb.gmra.mxu1 %v1348_v7  ;;  %1584 = vmatmul.bf16.vlgmr.msrb.gmra.mxu3 %v1348_v7  ;;  %v3626_v7 = vor.u32 %v4096_v5, %v3625_v4  ;;  %v3571_v9 = vld [vmem:[#allocation6 + $0x278] sm:$0xf0]  ;;  %v3537_v4 = vld [vmem:[#allocation6 + $0x230] sm:$0xf]  ;;  %v4074_v5 = vld [vmem:[#allocation6 + $0x234] sm:$0xf0] }
 0x276   : > { %2064 = vmatpush.bf16.msrb.mxu1 %v3570_v3  ;;  %v3574_v11 = vor.u32 %v4081_v6, %v3571_v9  ;;  %2104 = vmatpush.bf16.msra.mxu0 %v3630_v12  ;;  %v3603_v3 = vld [vmem:[#allocation6 + $0x2b8] sm:$0xf0]  ;;  %v3593_v6 = vld [vmem:[#allocation6 + $0x2a0] sm:$0xf]  ;;  %v4088_v9 = vld [vmem:[#allocation6 + $0x2a4] sm:$0xf0]  ;;  %v3542_v12 = vor.u32 %v4073_v10, %v3539_v18 }
 0x277   : > { %2078 = vmatpush.bf16.msrb.mxu2 %v3626_v7  ;;  %v3538_v7 = vor.u32 %v4074_v5, %v3537_v4  ;;  %v3715_v4 = vld [vmem:[#allocation8 + $0x9c] sm:$0xf0]  ;;  %v3702_v5 = vor.u32 %v4115_v60, %v3701_v58  ;;  %v4112_v18 = vld [vmem:[#allocation8 + $0x68] sm:$0xf0]  ;;  %v4127_v60 = vld [vmem:[#allocation8 + $0xe0] sm:$0xf0] }
 0x278   : > { %2090 = vmatpush.bf16.msrb.mxu3 %v3574_v11  ;;  %v3594_v11 = vor.u32 %v4088_v9, %v3593_v6  ;;  %v3823_v9 = vld [vmem:[#allocation8 + $0x174] sm:$0xf0]  ;;  %v3689_v10 = vld [vmem:[#allocation8 + $0x60] sm:$0xf] }
 0x27a   : > { %2065 = vmatpush.bf16.msrb.mxu1 %v3562_v16  ;;  %2105 = vmatpush.bf16.msra.mxu0 %v3622_v25  ;;  %v3529_v16 = vld [vmem:[#allocation6 + $0x220] sm:$0xf]  ;;  %v3590_v25 = vor.u32 %v4085_v24, %v3587_v44 }
 0x27b   : > { %2079 = vmatpush.bf16.msrb.mxu2 %v3618_v23  ;;  %v3530_v19 = vor.u32 %v4072_v17, %v3529_v16  ;;  %v3534_v23 = vor.u32 %v4071_v42, %v3531_v21  ;;  %v3703_v16 = vld [vmem:[#allocation8 + $0x84] sm:$0xf0]  ;;  %v4141_v17 = vld [vmem:[#allocation8 + $0x154] sm:$0xf]  ;;  %v3690_v42 = vor.u32 %v4112_v18, %v3689_v10  ;;  %v4122_v10 = vld [vmem:[#allocation8 + $0xb8] sm:$0xf0] }
 0x27c   : > { %2091 = vmatpush.bf16.msrb.mxu3 %v3566_v20  ;;  %v4086_v20 = vld [vmem:[#allocation6 + $0x294] sm:$0xf0]  ;;  %v3677_v21 = vld [vmem:[#allocation8 + $0x48] sm:$0xf] }
 0x27d   : > { %v3586_v22 = vor.u32 %v4086_v20, %v3585_v46  ;;  %v3811_v46 = vld [vmem:[#allocation8 + $0x15c] sm:$0xf0] }
 0x27e   : > { %2066 = vmatpush.bf16.msrb.mxu1 %v3554_v26  ;;  %2106 = vmatpush.bf16.msra.mxu0 %v3614_v35  ;;  %v3521_v26 = vld [vmem:[#allocation6 + $0x210] sm:$0xf]  ;;  %v4083_v35 = vld [vmem:[#allocation6 + $0x284] sm:$0xf]  ;;  %v3814_v24 = vor.u32 %v4141_v17, %v3811_v46  ;;  %v4105_v46 = vld [vmem:[#allocation8 + $0x34] sm:$0xf] }
 0x27f   : > { %2080 = vmatpush.bf16.msrb.mxu2 %v3610_v34  ;;  %v3522_v29 = vor.u32 %v4070_v27, %v3521_v26  ;;  %v3691_v26 = vld [vmem:[#allocation8 + $0x6c] sm:$0xf0]  ;;  %v4138_v27 = vld [vmem:[#allocation8 + $0x13c] sm:$0xf] }
 0x280   : > { %2092 = vmatpush.bf16.msrb.mxu3 %v3558_v32  ;;  %v3523_v32 = vld [vmem:[#allocation6 + $0x218] sm:$0xf0] }
 0x281   : > { %v3526_v34 = vor.u32 %v4069_v31, %v3523_v32  ;;  %v3802_v32 = vor.u32 %v4138_v27, %v3799_v30 }
 0x283   : > { %2081 = vmatpush.bf16.msrb.mxu2 %v3602_v63  ;;  %v3727_v63 = vld [vmem:[#allocation8 + $0xb4] sm:$0xf0] }
 0x284   : > { %2093 = vmatpush.bf16.msrb.mxu3 %v3550_v0  ;;  %v3730_v0 = vor.u32 %v4120_v62, %v3727_v63 }
 0x287   : > { %2082 = vmatpush.bf16.msrb.mxu2 %v3594_v11 }
 0x288   : > { %2094 = vmatpush.bf16.msrb.mxu3 %v3542_v12 }
 0x28b   : > { %2083 = vmatpush.bf16.msrb.mxu2 %v3586_v22  ;;  %v4109_v22 = vld [vmem:[#allocation8 + $0x50] sm:$0xf0] }
 0x28c   : > { %2095 = vmatpush.bf16.msrb.mxu3 %v3534_v23  ;;  %v3706_v23 = vor.u32 %v4114_v13, %v3703_v16  ;;  %v3787_v16 = vld [vmem:[#allocation8 + $0x12c] sm:$0xf0] }
 0x28f   : > { %2084 = vmatpush.bf16.msrb.mxu2 %v3578_v33  ;;  %v3678_v33 = vor.u32 %v4109_v22, %v3677_v21  ;;  %v4119_v21 = vld [vmem:[#allocation8 + $0xa0] sm:$0xf0]  ;;  %v3737_v22 = vld [vmem:[#allocation8 + $0xc0] sm:$0xf] }
 0x290   : > { %2096 = vmatpush.bf16.msrb.mxu3 %v3526_v34  ;;  %v3665_v34 = vld [vmem:[#allocation8 + $0x30] sm:$0xf] }
 0x2ee   : > { %v1598_v36 = vpop.f32.mrf.mxu0 }
 0x2f2   : > { %v1559_v38 = vpop.f32.mrf.mxu1 }
 0x2f3   : > { %v1560_v39 = vadd.f32 %v1559_v38, %v1386_v37  ;;  %v3513_v38 = vld [vmem:[#allocation6 + $0x200] sm:$0xf] }
 0x2f4   : > { %v1572_v40 = vpop.f32.mrf.mxu2 }
 0x2f5   : > { %v1573_v41 = vadd.f32 %v1572_v40, %v1560_v39  ;;  %v4068_v39 = vld [vmem:[#allocation6 + $0x204] sm:$0xf0]  ;;  %v4067_v40 = vld [vmem:[#allocation6 + $0x204] sm:$0xf] }
 0x2f6   : > { %v1600_v45 = vpop.f32.mrf.mxu0 }
 0x2f7   : > { %v4697_v47 = vadd.f32 %v1573_v41, %v4681_v1  ;;  %v3545_v1 = vld [vmem:[#allocation6 + $0x240] sm:$0xf]  ;;  %v3514_v41 = vor.u32 %v4068_v39, %v3513_v38  ;;  %v4108_v38 = vld [vmem:[#allocation8 + $0x4c] sm:$0xf]  ;;  %v3679_v39 = vld [vmem:[#allocation8 + $0x54] sm:$0xf0] }
 0x2f8   : > { %v1585_v48 = vpop.f32.mrf.mxu3  ;;  %v3546_v59 = vor.u32 %v4076_v57, %v3545_v1  ;;  %v3809_v1 = vld [vmem:[#allocation8 + $0x150] sm:$0xf] }
 0x2f9   : > { %v1604_v49 = vpack.c.bf16 %v4697_v47, %v4697_v47  ;;  %v1586_v50 = vadd.f32 %v1585_v48, %v1387_v43  ;;  %v3515_v43 = vld [vmem:[#allocation6 + $0x208] sm:$0xf0]  ;;  %v3725_v48 = vld [vmem:[#allocation8 + $0xa8] sm:$0xf] }
 0x2fa   : > { %v1561_v51 = vpop.f32.mrf.mxu1  ;;  %2067 = vmatpush.bf16.msrb.mxu1 %v3546_v59  ;;  %v3518_v45 = vor.u32 %v4067_v40, %v3515_v43  ;;  %v4142_v59 = vld [vmem:[#allocation8 + $0x158] sm:$0xf0]  ;;  %v3761_v43 = vld [vmem:[#allocation8 + $0xf0] sm:$0xf] }
 0x2fb   : > { %v1599_v52 = vadd.f32 %v1598_v36, %v1586_v50  ;;  %1814 = vmatmul.bf16.vlgmr.msra.gmra.mxu1 %v1604_v49  ;;  %1840 = vmatmul.bf16.vlgmr.msra.gmra.mxu3 %v1604_v49  ;;  %v3579_v36 = vld [vmem:[#allocation6 + $0x288] sm:$0xf0]  ;;  %v4121_v49 = vld [vmem:[#allocation8 + $0xb0] sm:$0xf0]  ;;  %v3713_v50 = vld [vmem:[#allocation8 + $0x90] sm:$0xf]  ;;  %v3810_v61 = vor.u32 %v4142_v59, %v3809_v1 }
 0x2fc   : > { %v1574_v53 = vpop.f32.mrf.mxu2  ;;  %v3582_v37 = vor.u32 %v4083_v35, %v3579_v36  ;;  %2097 = vmatpush.bf16.msrb.mxu3 %v3518_v45  ;;  %v3726_v51 = vor.u32 %v4121_v49, %v3725_v48  ;;  %v4106_v36 = vld [vmem:[#allocation8 + $0x38] sm:$0xf0]  ;;  %v3749_v59 = vld [vmem:[#allocation8 + $0xd8] sm:$0xf] }
 0x2fd   : > { %v4702_v54 = vadd.f32 %v1599_v52, %v4686_v8  ;;  %v3606_v8 = vor.u32 %v4089_v2, %v3603_v3  ;;  %v4118_v52 = vld [vmem:[#allocation8 + $0x98] sm:$0xf0]  ;;  %v3821_v53 = vld [vmem:[#allocation8 + $0x168] sm:$0xf]  ;;  %v3797_v2 = vld [vmem:[#allocation8 + $0x138] sm:$0xf] }
 0x2fe   : > { %2068 = vmatpush.bf16.msrb.mxu1 %v3538_v7  ;;  %v3714_v57 = vor.u32 %v4118_v52, %v3713_v50  ;;  %v4139_v3 = vld [vmem:[#allocation8 + $0x140] sm:$0xf0]  ;;  %v4144_v7 = vld [vmem:[#allocation8 + $0x16c] sm:$0xf]  ;;  %v4130_v45 = vld [vmem:[#allocation8 + $0xf8] sm:$0xf0]  ;;  %v3682_v52 = vor.u32 %v4108_v38, %v3679_v39 }
 0x2ff   : > { %v1605_v55 = vpack.c.bf16 %v4702_v54, %v4702_v54  ;;  %2107 = vmatpush.bf16.msra.mxu0 %v3606_v8  ;;  %v4117_v8 = vld [vmem:[#allocation8 + $0x94] sm:$0xf]  ;;  %v3798_v11 = vor.u32 %v4139_v3, %v3797_v2  ;;  %v3826_v12 = vor.u32 %v4144_v7, %v3823_v9  ;;  %v3762_v1 = vor.u32 %v4130_v45, %v3761_v43  ;;  %v3641_v2 = vld [vmem:[#allocation8] sm:$0xf]  ;;  %v4100_v3 = vld [vmem:[#allocation8 + $0x8] sm:$0xf0] }
 0x300   : > { %v1587_v56 = vpop.f32.mrf.mxu3  ;;  %2466 = vmatpush.bf16.msra.mxu3 %v3730_v0  ;;  %v3718_v6 = vor.u32 %v4117_v8, %v3715_v4  ;;  %v3733_v9 = vld [vmem:[#allocation8 + $0xb0] sm:$0xf]  ;;  %v3642_v18 = vor.u32 %v4100_v3, %v3641_v2  ;;  %v3763_v38 = vld [vmem:[#allocation8 + $0xfc] sm:$0xf0]  ;;  %v3817_v39 = vld [vmem:[#allocation8 + $0x158] sm:$0xf] }
 0x301   : > { %1827 = vmatmul.bf16.vlgmr.msra.gmra.mxu2 %v1605_v55  ;;  %1853 = vmatmul.bf16.vlgmr.msrb.gmra.mxu0 %v1605_v55  ;;  %v4145_v55 = vld [vmem:[#allocation8 + $0x170] sm:$0xf0]  ;;  %v4099_v45 = vld [vmem:[#allocation8 + $0x4] sm:$0xf] }
 0x302   : > { %2069 = vmatpush.bf16.msrb.mxu1 %v3530_v19  ;;  %v3822_v56 = vor.u32 %v4145_v55, %v3821_v53  ;;  %v3381_v19 = vld [vmem:[%s4757_s5 + $0x4] sm:$0x3]  ;;  %v3653_v55 = vld [vmem:[#allocation8 + $0x18] sm:$0xf]  ;;  %v4137_v3 = vld [vmem:[#allocation8 + $0x130] sm:$0xf0] }
 0x303   : > { %2108 = vmatpush.bf16.msra.mxu0 %v3598_v15  ;;  %v4136_v15 = vld [vmem:[#allocation8 + $0x128] sm:$0xf0]  ;;  %v1643_v31 = vperm.slane %v3381_v19, 1  ;;  %v1642_v48 = vperm.slane %v3381_v19, 0  ;;  %v3667_v19 = vld [vmem:[#allocation8 + $0x3c] sm:$0xf0] }
 0x304   : > { %2453 = vmatpush.bf16.msra.mxu2 %v3822_v56  ;;  %2467 = vmatpush.bf16.msra.mxu3 %v3718_v6  ;;  %v3786_v44 = vor.u32 %v4136_v15, %v3785_v14  ;;  %v4103_v56 = vld [vmem:[#allocation8 + $0x20] sm:$0xf0] }
 0x305   : > { %v3654_v62 = vor.u32 %v4103_v56, %v3653_v55  ;;  %v4135_v15 = vld [vmem:[#allocation8 + $0x124] sm:$0xf]  ;;  %v3751_v55 = vld [vmem:[#allocation8 + $0xe4] sm:$0xf0] }
 0x306   : > { %2070 = vmatpush.bf16.msrb.mxu1 %v3522_v29  ;;  %v4133_v29 = vld [vmem:[#allocation8 + $0x110] sm:$0xf0]  ;;  %v3790_v17 = vor.u32 %v4135_v15, %v3787_v16  ;;  %v3649_v15 = vld [vmem:[#allocation8 + $0x8] sm:$0xf] }
 0x307   : > { %2109 = vmatpush.bf16.msra.mxu0 %v3590_v25  ;;  %v4111_v25 = vld [vmem:[#allocation8 + $0x64] sm:$0xf]  ;;  %v4101_v16 = vld [vmem:[#allocation8 + $0x10] sm:$0xf0] }
 0x308   : > { %2454 = vmatpush.bf16.msra.mxu2 %v3810_v61  ;;  %2468 = vmatpush.bf16.msra.mxu3 %v3706_v23  ;;  %v3694_v35 = vor.u32 %v4111_v25, %v3691_v26  ;;  %v4124_v23 = vld [vmem:[#allocation8 + $0xc8] sm:$0xf0]  ;;  %v3775_v26 = vld [vmem:[#allocation8 + $0x114] sm:$0xf0] }
 0x309   : > { %v4132_v25 = vld [vmem:[#allocation8 + $0x10c] sm:$0xf] }
 0x30a   : > { %2071 = vmatpush.bf16.msrb.mxu1 %v3514_v41  ;;  %v3778_v27 = vor.u32 %v4132_v25, %v3775_v26  ;;  %v4162_v26 = vld [vmem:[#allocation9 + $0x78] sm:$0xff] }
 0x30b   : > { %2110 = vmatpush.bf16.msra.mxu0 %v3582_v37  ;;  %v3774_v37 = vor.u32 %v4133_v29, %v3773_v28  ;;  %v3829_v28 = vld [vmem:[#allocation8 + $0x170] sm:$0xf]  ;;  %v4146_v29 = vld [vmem:[#allocation8 + $0x178] sm:$0xf0] }
 0x30c   : > { %2455 = vmatpush.bf16.msra.mxu2 %v3798_v11  ;;  %2469 = vmatpush.bf16.msra.mxu3 %v3694_v35  ;;  %v3830_v30 = vor.u32 %v4146_v29, %v3829_v28  ;;  %v4116_v35 = vld [vmem:[#allocation8 + $0x88] sm:$0xf0] }
 0x30e   : > { %2440 = vmatpush.bf16.msra.mxu1 %v3726_v51  ;;  %v3666_v51 = vor.u32 %v4106_v36, %v3665_v34 }
 0x30f   : > { %2479 = vmatpush.bf16.msrb.mxu0 %v3826_v12  ;;  %v3734_v12 = vor.u32 %v4122_v10, %v3733_v9  ;;  %v4134_v9 = vld [vmem:[#allocation8 + $0x118] sm:$0xf0] }
 0x310   : > { %2456 = vmatpush.bf16.msra.mxu2 %v3786_v44  ;;  %2470 = vmatpush.bf16.msra.mxu3 %v3682_v52  ;;  %v3738_v44 = vor.u32 %v4124_v23, %v3737_v22  ;;  %v4125_v22 = vld [vmem:[#allocation8 + $0xd0] sm:$0xf0]  ;;  %v3510_v23 = vld [vmem:[%s4759_s7 + $0x4] sm:$0x3] }
 0x311   : > { %v1900_v25 = vperm.slane %v3510_v23, 0 }
 0x312   : > { %2441 = vmatpush.bf16.msra.mxu1 %v3714_v57 }
 0x313   : > { %2480 = vmatpush.bf16.msrb.mxu0 %v3814_v24 }
 0x314   : > { %2457 = vmatpush.bf16.msra.mxu2 %v3774_v37  ;;  %v4129_v37 = vld [vmem:[#allocation8 + $0xf4] sm:$0xf] }
 0x316   : > { %2442 = vmatpush.bf16.msra.mxu1 %v3702_v5  ;;  %v3750_v5 = vor.u32 %v4127_v60, %v3749_v59  ;;  %v3685_v59 = vld [vmem:[#allocation8 + $0x50] sm:$0xf]  ;;  %v4110_v60 = vld [vmem:[#allocation8 + $0x58] sm:$0xf0] }
 0x317   : > { %2481 = vmatpush.bf16.msrb.mxu0 %v3802_v32  ;;  %v3655_v32 = vld [vmem:[#allocation8 + $0x24] sm:$0xf0] }
 0x318   : > { %2458 = vmatpush.bf16.msra.mxu2 %v3762_v1  ;;  %v3805_v1 = vld [vmem:[#allocation8 + $0x140] sm:$0xf] }
 0x31a   : > { %2443 = vmatpush.bf16.msra.mxu1 %v3690_v42  ;;  %v3670_v42 = vor.u32 %v4105_v46, %v3667_v19  ;;  %v3757_v46 = vld [vmem:[#allocation8 + $0xe0] sm:$0xf]  ;;  %v4128_v19 = vld [vmem:[#allocation8 + $0xe8] sm:$0xf0] }
 0x31b   : > { %2482 = vmatpush.bf16.msrb.mxu0 %v3790_v17 }
 0x31c   : > { %2459 = vmatpush.bf16.msra.mxu2 %v3750_v5  ;;  %2471 = vmatpush.bf16.msra.mxu3 %v3670_v42  ;;  %v4107_v5 = vld [vmem:[#allocation8 + $0x40] sm:$0xf0]  ;;  %v3758_v42 = vor.u32 %v4128_v19, %v3757_v46 }
 0x31e   : > { %2444 = vmatpush.bf16.msra.mxu1 %v3678_v33  ;;  %v3709_v33 = vld [vmem:[#allocation8 + $0x80] sm:$0xf] }
 0x31f   : > { %2483 = vmatpush.bf16.msrb.mxu0 %v3778_v27  ;;  %v3710_v36 = vor.u32 %v4116_v35, %v3709_v33  ;;  %v4154_v27 = vld [vmem:[#allocation9 + $0x38] sm:$0xff] }
 0x320   : > { %2460 = vmatpush.bf16.msra.mxu2 %v3738_v44 }
 0x322   : > { %2445 = vmatpush.bf16.msra.mxu1 %v3666_v51  ;;  %v4113_v51 = vld [vmem:[#allocation8 + $0x70] sm:$0xf0] }
 0x326   : > { %2446 = vmatpush.bf16.msra.mxu1 %v3654_v62  ;;  %v4123_v62 = vld [vmem:[#allocation8 + $0xc4] sm:$0xf] }
 0x32a   : > { %2447 = vmatpush.bf16.msra.mxu1 %v3642_v18  ;;  %v3661_v18 = vld [vmem:[#allocation8 + $0x20] sm:$0xf] }
 0x378   : > { %v1815_v20 = vpop.f32.mrf.mxu1 }
 0x379   : > { %v1816_v57 = vadd.f32 %v1815_v20, %v1642_v48  ;;  %v3721_v20 = vld [vmem:[#allocation8 + $0x98] sm:$0xf]  ;;  %v3643_v48 = vld [vmem:[#allocation8 + $0xc] sm:$0xf0] }
 0x37a   : > { %v3722_v24 = vor.u32 %v4119_v21, %v3721_v20  ;;  %v3650_v20 = vor.u32 %v4101_v16, %v3649_v15  ;;  %v3745_v21 = vld [vmem:[#allocation8 + $0xc8] sm:$0xf] }
 0x37e   : > { %v1841_v40 = vpop.f32.mrf.mxu3  ;;  %v1854_v41 = vpop.f32.mrf.mxu0 }
 0x37f   : > { %v1842_v49 = vadd.f32 %v1841_v40, %v1643_v31  ;;  %v4102_v31 = vld [vmem:[#allocation8 + $0x1c] sm:$0xf]  ;;  %v3766_v40 = vor.u32 %v4129_v37, %v3763_v38  ;;  %v4160_v38 = vld [vmem:[#allocation9 + $0x68] sm:$0xff] }
 0x380   : > { %v1817_v50 = vpop.f32.mrf.mxu1  ;;  %v3658_v34 = vor.u32 %v4102_v31, %v3655_v32  ;;  %v4153_v31 = vld [vmem:[#allocation9 + $0x30] sm:$0xff] }
 0x381   : > { %v1855_v53 = vadd.f32 %v1854_v41, %v1842_v49  ;;  %v4143_v41 = vld [vmem:[#allocation8 + $0x160] sm:$0xf0]  ;;  %v3697_v49 = vld [vmem:[#allocation8 + $0x68] sm:$0xf]  ;;  %2484 = vmatpush.bf16.msrb.mxu0 %v3766_v40  ;;  %v3646_v50 = vor.u32 %v4099_v45, %v3643_v48 }
 0x382   : > { %2472 = vmatpush.bf16.msra.mxu3 %v3658_v34  ;;  %v3818_v43 = vor.u32 %v4143_v41, %v3817_v39  ;;  %v3698_v52 = vor.u32 %v4113_v51, %v3697_v49  ;;  %v1901_v34 = vperm.slane %v3510_v23, 1  ;;  %v4159_v48 = vld [vmem:[#allocation9 + $0x60] sm:$0xff] }
 0x383   : > { %v1859_v58 = vmul.f32 0.2, %v1855_v53  ;;  %v4250_v23 = vld [vmem:[%s4763_s11] ss:$0 sm:$0xff] }
 0x384   : > { %v1828_v61 = vpop.f32.mrf.mxu2 }
 0x385   : > { %v1861_v63 = vmax.f32 %v1855_v53, %v1859_v58  ;;  %v1829_v0 = vadd.f32 %v1828_v61, %v1816_v57  ;;  %v4126_v53 = vld [vmem:[#allocation8 + $0xdc] sm:$0xf]  ;;  %v4140_v57 = vld [vmem:[#allocation8 + $0x148] sm:$0xf0]  ;;  %v3686_v61 = vor.u32 %v4110_v60, %v3685_v59  ;;  %v4147_v59 = vld [vmem:[#allocation9] sm:$0xff] }
 0x386   : > { %v1843_v8 = vpop.f32.mrf.mxu3  ;;  %v1856_v4 = vpop.f32.mrf.mxu0  ;;  %2473 = vmatpush.bf16.msra.mxu3 %v3646_v50  ;;  %v3754_v56 = vor.u32 %v4126_v53, %v3751_v55  ;;  %v3806_v58 = vor.u32 %v4140_v57, %v3805_v1  ;;  %v4151_v53 = vld [vmem:[#allocation9 + $0x20] sm:$0xff]  ;;  %v4157_v55 = vld [vmem:[#allocation9 + $0x50] sm:$0xff]  ;;  %v4156_v1 = vld [vmem:[#allocation9 + $0x48] sm:$0xff] }
 0x387   : > { %v1863_v6 = vpack.c.bf16 %v1861_v63, %v1861_v63  ;;  %v1858_v7 = vmul.f32 0.2, %v1829_v0  ;;  %v3739_v63 = vld [vmem:[#allocation8 + $0xcc] sm:$0xf0]  ;;  %v3673_v4 = vld [vmem:[#allocation8 + $0x38] sm:$0xf] }
 0x388   : > { %2485 = vmatpush.bf16.msrb.mxu0 %v3754_v56  ;;  %v3742_v2 = vor.u32 %v4123_v62, %v3739_v63  ;;  %v4150_v56 = vld [vmem:[#allocation9 + $0x18] sm:$0xff]  ;;  %v4155_v57 = vld [vmem:[#allocation9 + $0x40] sm:$0xff] }
 0x389   : > { %v1860_v11 = vmax.f32 %v1829_v0, %v1858_v7  ;;  %2085 = vmatmul.bf16.vlgmr.msrb.gmra.mxu2 %v1863_v6  ;;  %2111 = vmatmul.bf16.vlgmr.msra.gmra.mxu0 %v1863_v6  ;;  %v3793_v0 = vld [vmem:[#allocation8 + $0x128] sm:$0xf]  ;;  %v3674_v6 = vor.u32 %v4107_v5, %v3673_v4  ;;  %v3781_v7 = vld [vmem:[#allocation8 + $0x110] sm:$0xf] }
 0x38a   : > { %2505 = vmatpush.bf16.msrb.mxu2 %v3830_v30  ;;  %v3794_v8 = vor.u32 %v4137_v3, %v3793_v0  ;;  %v3782_v10 = vor.u32 %v4134_v9, %v3781_v7  ;;  %v4161_v30 = vld [vmem:[#allocation9 + $0x70] sm:$0xff] }
 0x38b   : > { %v1862_v13 = vpack.c.bf16 %v1860_v11, %v1860_v11  ;;  %v4104_v11 = vld [vmem:[#allocation8 + $0x28] sm:$0xf0] }
 0x38c   : > { %v1830_v14 = vpop.f32.mrf.mxu2  ;;  %2486 = vmatpush.bf16.msrb.mxu0 %v3742_v2 }
 0x38d   : > { %2072 = vmatmul.bf16.vlgmr.msrb.gmra.mxu1 %v1862_v13  ;;  %2098 = vmatmul.bf16.vlgmr.msrb.gmra.mxu3 %v1862_v13  ;;  %v3662_v13 = vor.u32 %v4104_v11, %v3661_v18  ;;  %v4131_v14 = vld [vmem:[#allocation8 + $0x100] sm:$0xf0] }
 0x38e   : > { %2492 = vmatpush.bf16.msrb.mxu1 %v3734_v12  ;;  %2506 = vmatpush.bf16.msrb.mxu2 %v3818_v43  ;;  %v3769_v12 = vld [vmem:[#allocation8 + $0xf8] sm:$0xf] }
 0x38f   : > { %v3770_v17 = vor.u32 %v4131_v14, %v3769_v12  ;;  %2664 = vmatpush.bf16.msrb.mxu3 %v4154_v27 }
 0x390   : > { %2677 = vmatpush.bf16.msra.mxu0 %v4162_v26 }
 0x392   : > { %2493 = vmatpush.bf16.msrb.mxu1 %v3722_v24  ;;  %2507 = vmatpush.bf16.msrb.mxu2 %v3806_v58  ;;  %v3746_v24 = vor.u32 %v4125_v22, %v3745_v21  ;;  %v4148_v58 = vld [vmem:[#allocation9 + $0x8] sm:$0xff] }
 0x393   : > { %2665 = vmatpush.bf16.msrb.mxu3 %v4153_v31 }
 0x394   : > { %2678 = vmatpush.bf16.msra.mxu0 %v4161_v30 }
 0x396   : > { %2494 = vmatpush.bf16.msrb.mxu1 %v3710_v36  ;;  %2508 = vmatpush.bf16.msrb.mxu2 %v3794_v8 }
 0x398   : > { %2679 = vmatpush.bf16.msra.mxu0 %v4160_v38 }
 0x39a   : > { %2495 = vmatpush.bf16.msrb.mxu1 %v3698_v52  ;;  %2509 = vmatpush.bf16.msrb.mxu2 %v3782_v10  ;;  %v4158_v52 = vld [vmem:[#allocation9 + $0x58] sm:$0xff] }
 0x39c   : > { %2680 = vmatpush.bf16.msra.mxu0 %v4159_v48 }
 0x39e   : > { %2496 = vmatpush.bf16.msrb.mxu1 %v3686_v61  ;;  %2510 = vmatpush.bf16.msrb.mxu2 %v3770_v17  ;;  %v2518_v61 = vld [vmem:[%s4761_s9] sm:$0x3] }
 0x39f   : > { %v2521_v62 = vperm.slane %v2518_v61, 1  ;;  %v2520_v5 = vperm.slane %v2518_v61, 0 }
 0x3a0   : > { %2681 = vmatpush.bf16.msra.mxu0 %v4158_v52 }
 0x3a2   : > { %2497 = vmatpush.bf16.msrb.mxu1 %v3674_v6  ;;  %2511 = vmatpush.bf16.msrb.mxu2 %v3758_v42 }
 0x3a4   : > { %2682 = vmatpush.bf16.msra.mxu0 %v4157_v55 }
 0x3a6   : > { %2498 = vmatpush.bf16.msrb.mxu1 %v3662_v13  ;;  %2512 = vmatpush.bf16.msrb.mxu2 %v3746_v24 }
 0x3a8   : > { %2683 = vmatpush.bf16.msra.mxu0 %v4156_v1 }
 0x3aa   : > { %2499 = vmatpush.bf16.msrb.mxu1 %v3650_v20 }
 0x3ac   : > { %2684 = vmatpush.bf16.msra.mxu0 %v4155_v57 }
 0x406   : > { %v2112_v44 = vpop.f32.mrf.mxu0 }
 0x40a   : > { %v2073_v28 = vpop.f32.mrf.mxu1 }
 0x40b   : > { %v2074_v29 = vadd.f32 %v2073_v28, %v1900_v25 }
 0x40c   : > { %v2086_v32 = vpop.f32.mrf.mxu2 }
 0x40d   : > { %v2087_v33 = vadd.f32 %v2086_v32, %v2074_v29 }
 0x40e   : > { %v2114_v35 = vpop.f32.mrf.mxu0 }
 0x40f   : > { %v2116_v36 = vadd.f32 %v2087_v33, %v4697_v47  ;;  %v4152_v47 = vld [vmem:[#allocation9 + $0x28] sm:$0xff] }
 0x410   : > { %v2099_v37 = vpop.f32.mrf.mxu3  ;;  %2666 = vmatpush.bf16.msrb.mxu3 %v4152_v47 }
 0x411   : > { %v2118_v39 = vpack.c.bf16 %v2116_v36, %v2116_v36  ;;  %v2100_v40 = vadd.f32 %v2099_v37, %v1901_v34 }
 0x412   : > { %v2075_v41 = vpop.f32.mrf.mxu1 }
 0x413   : > { %v2113_v43 = vadd.f32 %v2112_v44, %v2100_v40  ;;  %2448 = vmatmul.bf16.vlgmr.msra.gmra.mxu1 %v2118_v39  ;;  %2474 = vmatmul.bf16.vlgmr.msra.gmra.mxu3 %v2118_v39 }
 0x414   : > { %v2088_v45 = vpop.f32.mrf.mxu2  ;;  %2667 = vmatpush.bf16.msrb.mxu3 %v4151_v53 }
 0x415   : > { %v2117_v49 = vadd.f32 %v2113_v43, %v4702_v54  ;;  %v4149_v54 = vld [vmem:[#allocation9 + $0x10] sm:$0xff] }
 0x417   : > { %v2119_v50 = vpack.c.bf16 %v2117_v49, %v2117_v49 }
 0x418   : > { %v2101_v51 = vpop.f32.mrf.mxu3  ;;  %2668 = vmatpush.bf16.msrb.mxu3 %v4150_v56 }
 0x419   : > { %2461 = vmatmul.bf16.vlgmr.msra.gmra.mxu2 %v2119_v50  ;;  %2487 = vmatmul.bf16.vlgmr.msrb.gmra.mxu0 %v2119_v50 }
 0x41c   : > { %2669 = vmatpush.bf16.msrb.mxu3 %v4149_v54 }
 0x420   : > { %2670 = vmatpush.bf16.msrb.mxu3 %v4148_v58 }
 0x423   : > { %2500 = vmatmul.bf16.vlgmr.msrb.gmra.mxu1 %v2118_v39 }
 0x424   : > { %2671 = vmatpush.bf16.msrb.mxu3 %v4147_v59 }
 0x429   : > { %2513 = vmatmul.bf16.vlgmr.msrb.gmra.mxu2 %v2119_v50 }
 0x490   : > { %v2449_v60 = vpop.f32.mrf.mxu1 }
 0x496   : > { %v2475_v63 = vpop.f32.mrf.mxu3  ;;  %v2488_v0 = vpop.f32.mrf.mxu0 }
 0x497   : > { %v2489_v2 = vadd.f32 %v2488_v0, %v2475_v63 }
 0x498   : > { %v2451_v3 = vpop.f32.mrf.mxu1 }
 0x499   : > { %v2525_v8 = vadd.f32 %v2521_v62, %v2489_v2 }
 0x49b   : > { %v2527_v4 = vmul.f32 0.2, %v2525_v8 }
 0x49c   : > { %v2462_v6 = vpop.f32.mrf.mxu2 }
 0x49d   : > { %v2529_v7 = vmax.f32 %v2525_v8, %v2527_v4  ;;  %v2463_v9 = vadd.f32 %v2462_v6, %v2449_v60 }
 0x49e   : > { %v2477_v10 = vpop.f32.mrf.mxu3  ;;  %v2490_v18 = vpop.f32.mrf.mxu0 }
 0x49f   : > { %v2531_v11 = vpack.c.bf16 %v2529_v7, %v2529_v7  ;;  %v2524_v12 = vadd.f32 %v2520_v5, %v2463_v9 }
 0x4a0   : > { %v2501_v13 = vpop.f32.mrf.mxu1 }
 0x4a1   : > { %v2526_v14 = vmul.f32 0.2, %v2524_v12  ;;  %2685 = vmatmul.bf16.vlgmr.msra.gmra.mxu0 %v2531_v11 }
 0x4a3   : > { %v2528_v15 = vmax.f32 %v2524_v12, %v2526_v14 }
 0x4a4   : > { %v2464_v16 = vpop.f32.mrf.mxu2 }
 0x4a5   : > { %v2530_v17 = vpack.c.bf16 %v2528_v15, %v2528_v15 }
 0x4a7   : > { %2672 = vmatmul.bf16.vlgmr.msrb.gmra.mxu3 %v2530_v17 }
 0x4a8   : > { %v2503_v46 = vpop.f32.mrf.mxu1 }
 0x4ac   : > { %v2514_v19 = vpop.f32.mrf.mxu2 }
 0x4ad   : > { %v2515_v20 = vadd.f32 %v2514_v19, %v2501_v13 }
 0x4b4   : > { %v2516_v42 = vpop.f32.mrf.mxu2 }
 0x51e   : > { %v2686_v21 = vpop.f32.mrf.mxu0 }
 0x526   : > { %v2688_v22 = vpop.f32.mrf.mxu0 }
 0x52a   : > { %v2673_v24 = vpop.f32.mrf.mxu3 }
 0x52b   : > { %v2674_v44 = vadd.f32 %v4250_v23, %v2673_v24 }
 0x52d   : > { %v2687_v25 = vadd.f32 %v2686_v21, %v2674_v44 }
 0x52f   : > { %v2690_v26 = vadd.f32 %v2687_v25, %v2515_v20 }
 0x531   : > { %2691 = vst [vmem:[%s484_s6] sm:$0xff] %v2690_v26 }
 0x532   : > { %v2675_v27 = vpop.f32.mrf.mxu3 }
 0x533   : > { %4398 = shalt.err (!%p4395_p8)
}
 0x534   : > { %4179 = dma.vmem_to_hbm [thread:$0]  (%p4560_p5), %s2706_s18, 128, %s2708_s19, %s2693_s25  }
 0x535 PF: > { %s4789_s13 = sld [smem:[#allocation18_spill]] }
 0x536   : > { %s4790_s15 = sld [smem:[#allocation16_spill]] }
 0x53b   : > { %p4206_p9 = scmp.ge.s32.totalorder %s4789_s13, 2 }
 0x53c   : > { %s2719_s28 = sand.u32 1, %s4790_s15  }
 0x53d   : > { %p4195_p10 = pnand %p4206_p9, %p4564_p6  ;;  %s2720_s16 = scalar_lea.sflag [#allocation5], %s2719_s28 }
 0x53f   : > { %p4196_p11 = pneg %p4195_p10 }
 0x541   : > { %4428 = dma.done.wait (%p4196_p11), %s2720_s16, 128  }
 0x542   : > { %4430 = vsyncadd (%p4196_p11), %s2720_s16, 4294967168  ;;  %s4792_s24 = sld [smem:[#allocation19_spill]]  ;;  %s4795_s21 = smov %s4437_s22 }
 0x543   : > { %s4793_s17 = sld [smem:[#allocation17_spill]] }
 0x544   : > { %s4794_s23 = sld [smem:[#allocation20_spill]] }
 0x548   : > { %p25_p12 = scmp.ge.s32.totalorder %s4792_s24, 4  }
 0x549   : > { %s4796_s22 = smov %s4793_s17 }
 0x54a   :  { %27 = sbr.rel (!%p25_p12) target bundleno = 9 (0x9), region = 131 }
 0x54f   :  { %2726 = vsyncpa [#allocation4], 1 }
 0x550   :  { %2728 = vsyncpa [#allocation4 + $0x1], 1 }
 0x551   :  { %2729 = vsyncpa [#allocation7], 1 }
 0x552   :  { %2730 = vsyncpa [#allocation10], 1 }
 0x553   :  { %2731 = vsyncpa [#allocation5], 1 }
 0x554   :  { %2733 = vsyncpa [#allocation5 + $0x1], 1 }

</bundles_post_ra>
